<compile_context>
chip_gen: v5e
topology: v5e:2x2
jax: 0.10.0
libtpu: 0.0.40
codegen_flags: <defaults>
</compile_context>

<pallas_src>
import functools

import jax
import jax.numpy as jnp
from jax import lax
from jax.experimental import pallas as pl
from jax.experimental.pallas import tpu as pltpu


# ------------------------- fused Conv3d kernel -------------------------

def _conv3d_kernel(x_ref, w_ref, b_ref, o_ref, *, cin, cout, k, relu):
    """Valid 3-D conv (stride 1) + bias + optional ReLU for one batch item.

    x_ref: (1, cin, D, H, W) VMEM
    w_ref: (cout*cin*k^3,)   SMEM, row-major (co, ci, kd, kh, kw)
    b_ref: (cout,)           SMEM
    o_ref: (1, cout, Do, Ho, Wo) VMEM
    """
    Do, Ho, Wo = o_ref.shape[2], o_ref.shape[3], o_ref.shape[4]
    k3 = k * k * k

    def body(dz, carry):
        acc = [None] * cout
        for ci in range(cin):
            for kd in range(k):
                for kh in range(k):
                    for kw in range(k):
                        # shifted (Ho, Wo) window of the resident input block
                        slab = x_ref[0, ci, dz + kd, kh:kh + Ho, kw:kw + Wo]
                        base = ((ci * k + kd) * k + kh) * k + kw
                        for co in range(cout):
                            t = slab * w_ref[co * cin * k3 + base]
                            acc[co] = t if acc[co] is None else acc[co] + t
        for co in range(cout):
            r = acc[co] + b_ref[co]
            if relu:
                r = jnp.maximum(r, 0.0)
            o_ref[0, co, dz] = r
        return carry

    lax.fori_loop(0, Do, body, 0)


def conv3d(x, w, b, relu):
    """x:(B,Cin,D,H,W), w:(Cout,Cin,k,k,k), b:(Cout,); valid conv, stride 1."""
    B, Cin, D, H, W = x.shape
    Cout, _, k, _, _ = w.shape
    Do, Ho, Wo = D - k + 1, H - k + 1, W - k + 1
    wflat = w.reshape(-1).astype(jnp.float32)          # (Cout*Cin*k^3,)
    return pl.pallas_call(
        functools.partial(_conv3d_kernel, cin=Cin, cout=Cout, k=k, relu=relu),
        out_shape=jax.ShapeDtypeStruct((B, Cout, Do, Ho, Wo), jnp.float32),
        grid=(B,),
        in_specs=[
            pl.BlockSpec((1, Cin, D, H, W), lambda bi: (bi, 0, 0, 0, 0)),
            pl.BlockSpec(memory_space=pltpu.MemorySpace.SMEM),
            pl.BlockSpec(memory_space=pltpu.MemorySpace.SMEM),
        ],
        out_specs=pl.BlockSpec((1, Cout, Do, Ho, Wo), lambda bi: (bi, 0, 0, 0, 0)),
        compiler_params=pltpu.CompilerParams(dimension_semantics=("parallel",)),
    )(x, wflat, b.astype(jnp.float32))


def convtranspose3d(x, w, b):
    """PyTorch ConvTranspose3d (stride=1, pad=0); w:(Cin,Cout,k,k,k)."""
    k = w.shape[2]
    xpad = jnp.pad(x, ((0, 0), (0, 0),
                       (k - 1, k - 1), (k - 1, k - 1), (k - 1, k - 1)))
    w_conv = jnp.transpose(jnp.flip(w, axis=(2, 3, 4)), (1, 0, 2, 3, 4))  # (Cout,Cin,k,k,k)
    return conv3d(xpad, w_conv, b, relu=False)


# ------------------------- MaxPool / MaxUnpool kernels -------------------------

_POOL_MAX_TILE = 16384


def _round_up(n, m):
    return ((n + m - 1) // m) * m


def _pool_tiling(M):
    Mp = _round_up(M, 128)
    if Mp <= _POOL_MAX_TILE:
        return Mp, Mp
    return _round_up(M, _POOL_MAX_TILE), _POOL_MAX_TILE


def _maxpool_kernel(x_ref, max_ref, idx_ref):
    v = x_ref[...]                              # (8, TL): 2x2x2 window values
    best = v[0:1, :]
    bidx = jnp.zeros_like(best, dtype=jnp.int32)
    for kpos in range(1, 8):
        cur = v[kpos:kpos + 1, :]
        better = cur > best                     # strict ">" keeps first max
        best = jnp.where(better, cur, best)
        bidx = jnp.where(better, jnp.int32(kpos), bidx)
    max_ref[...] = best
    idx_ref[...] = bidx


def pallas_maxpool2(x):
    """MaxPool3d(kernel_size=2, stride=2, return_indices=True), floor mode."""
    B, C, D, H, W = x.shape
    Do, Ho, Wo = D // 2, H // 2, W // 2
    xc = x[:, :, :2 * Do, :2 * Ho, :2 * Wo]
    xw = xc.reshape(B, C, Do, 2, Ho, 2, Wo, 2)
    xw = jnp.transpose(xw, (3, 5, 7, 0, 1, 2, 4, 6))      # (kd,kh,kw,B,C,Do,Ho,Wo)
    M = B * C * Do * Ho * Wo
    Mp, TL = _pool_tiling(M)
    xw = jnp.pad(xw.reshape(8, M), ((0, 0), (0, Mp - M)))
    mx, idx = pl.pallas_call(
        _maxpool_kernel,
        out_shape=(jax.ShapeDtypeStruct((1, Mp), jnp.float32),
                   jax.ShapeDtypeStruct((1, Mp), jnp.int32)),
        grid=(Mp // TL,),
        in_specs=[pl.BlockSpec((8, TL), lambda i: (0, i))],
        out_specs=(pl.BlockSpec((1, TL), lambda i: (0, i)),
                   pl.BlockSpec((1, TL), lambda i: (0, i))),
        compiler_params=pltpu.CompilerParams(dimension_semantics=("parallel",)),
    )(xw)
    return mx[:, :M].reshape(B, C, Do, Ho, Wo), idx        # idx kept padded (1, Mp)


def _maxunpool_relu_kernel(v_ref, idx_ref, o_ref):
    # fused ReLU: ReLU(unpool(x)) == unpool(ReLU(x)) since zeros stay zero
    v = jnp.maximum(v_ref[...], 0.0)                        # (1, TL)
    idx = idx_ref[...]                                      # (1, TL)
    kiota = lax.broadcasted_iota(jnp.int32, o_ref.shape, 0)  # (8, TL)
    o_ref[...] = jnp.where(kiota == idx, v, 0.0)


def pallas_maxunpool2_relu(pooled, idx, out_shape):
    """ReLU(MaxUnpool3d(kernel_size=2, stride=2, output_size=out_shape))."""
    B, C, Do, Ho, Wo = pooled.shape
    D, H, W = out_shape[2], out_shape[3], out_shape[4]
    M = B * C * Do * Ho * Wo
    Mp, TL = _pool_tiling(M)
    v = jnp.pad(pooled.reshape(1, M), ((0, 0), (0, Mp - M)))
    scat = pl.pallas_call(
        _maxunpool_relu_kernel,
        out_shape=jax.ShapeDtypeStruct((8, Mp), jnp.float32),
        grid=(Mp // TL,),
        in_specs=[pl.BlockSpec((1, TL), lambda i: (0, i)),
                  pl.BlockSpec((1, TL), lambda i: (0, i))],
        out_specs=pl.BlockSpec((8, TL), lambda i: (0, i)),
        compiler_params=pltpu.CompilerParams(dimension_semantics=("parallel",)),
    )(v, idx)
    scat = scat[:, :M].reshape(2, 2, 2, B, C, Do, Ho, Wo)
    scat = jnp.transpose(scat, (3, 4, 5, 0, 6, 1, 7, 2))    # (B,C,Do,kd,Ho,kh,Wo,kw)
    up = scat.reshape(B, C, 2 * Do, 2 * Ho, 2 * Wo)
    return jnp.pad(up, ((0, 0), (0, 0),
                        (0, D - 2 * Do), (0, H - 2 * Ho), (0, W - 2 * Wo)))


# ------------------------- fused MLP kernel -------------------------

def _mlp_kernel(*refs, n_layers):
    x_ref, o_ref = refs[0], refs[-1]
    h = x_ref[...]
    for i in range(n_layers):
        w = refs[1 + 2 * i][...]
        b = refs[2 + 2 * i][...]
        h = jnp.dot(h, w, preferred_element_type=jnp.float32) + b
        if i < n_layers - 1:
            h = jnp.maximum(h, 0.0)
    o_ref[...] = h.astype(o_ref.dtype)


def pallas_mlp(h, layers):
    """Whole Linear(+ReLU) chain in one kernel; all weights resident in VMEM."""
    B, F0 = h.shape
    Bp = _round_up(B, 8)
    hp = h if Bp == B else jnp.pad(h, ((0, Bp - B), (0, 0)))
    args = [hp]
    in_specs = [pl.BlockSpec((Bp, F0), lambda i: (0, 0))]
    for (w, b) in layers:
        fin, fout = w.shape
        args.append(w)
        in_specs.append(pl.BlockSpec((fin, fout), lambda i: (0, 0)))
        args.append(b.reshape(1, fout))
        in_specs.append(pl.BlockSpec((1, fout), lambda i: (0, 0)))
    Fout = layers[-1][0].shape[1]
    out = pl.pallas_call(
        functools.partial(_mlp_kernel, n_layers=len(layers)),
        out_shape=jax.ShapeDtypeStruct((Bp, Fout), jnp.float32),
        grid=(1,),
        in_specs=in_specs,
        out_specs=pl.BlockSpec((Bp, Fout), lambda i: (0, 0)),
    )(*args)
    return out[:B]


# ------------------------- parameters -------------------------

def _uniform(key, shape, bound):
    return jax.random.uniform(key, shape, jnp.float32, -bound, bound)


def init_params(key, img_size, conv_layers, mlp_hidden, out_channels=3):
    cin0 = img_size[1]
    spatial = list(img_size[2:])
    keys = iter(jax.random.split(key, 64))

    down = []
    chans = cin0
    for (k, cg, pool) in conv_layers:
        cout = chans * cg
        bound = 1.0 / float(chans * k ** 3) ** 0.5
        down.append((_uniform(next(keys), (cout, chans, k, k, k), bound),
                     _uniform(next(keys), (cout,), bound)))
        spatial = [s - k + 1 for s in spatial]
        if pool > 1:
            spatial = [s // pool for s in spatial]
        chans = cout

    n_features = chans * spatial[0] * spatial[1] * spatial[2]
    widths = [n_features] + list(mlp_hidden) + [n_features]
    mlp = []
    for i in range(len(widths) - 1):
        fin, fout = widths[i], widths[i + 1]
        bound = 1.0 / float(fin) ** 0.5
        mlp.append((_uniform(next(keys), (fin, fout), bound),   # stored as (in, out)
                    _uniform(next(keys), (fout,), bound)))

    prodcg = 1
    for (_, cg, _) in conv_layers:
        prodcg *= cg
    nextchans = cin0 * prodcg
    up = []
    for i in range(len(conv_layers) - 1, -1, -1):
        k, cg, _ = conv_layers[i]
        cin = nextchans
        cout = out_channels if i == 0 else nextchans // cg
        bound = 1.0 / float(cout * k ** 3) ** 0.5
        up.append((_uniform(next(keys), (cin, cout, k, k, k), bound),
                   _uniform(next(keys), (cout,), bound)))
        nextchans = cout
    # last_layer_scale = 0.0 in MomentumPredictor.__init__: zero the final ConvTranspose3d
    wl, bl = up[-1]
    up[-1] = (jnp.zeros_like(wl), jnp.zeros_like(bl))
    return {"down": down, "mlp": mlp, "up": up}


# ------------------------- forward -------------------------

def momentum_predictor_forward(params, x, conv_layers):
    d = x
    pool_info = []                                  # per down block: (size_before_pool, idx)
    for (w, b), (k, cg, pool) in zip(params["down"], conv_layers):
        d = conv3d(d, w, b, relu=True)              # Conv3d + ReLU (fused)
        if pool > 1:
            sz = d.shape
            d, idx = pallas_maxpool2(d)
            pool_info.append((sz, idx))
        else:
            pool_info.append(None)

    sh = d.shape
    d = pallas_mlp(d.reshape(x.shape[0], -1), params["mlp"]).reshape(sh)

    n = len(conv_layers)
    for j, (wt, bt) in enumerate(params["up"]):
        i = n - 1 - j                               # corresponding down block
        if conv_layers[i][2] > 1:
            sz, idx = pool_info[i]
            d = pallas_maxunpool2_relu(d, idx, sz)  # MaxUnpool3d + ReLU (fused)
        else:
            d = jnp.maximum(d, 0.0)
        d = convtranspose3d(d, wt, bt)
    return d


# ------------------------- reference ops (correctness check) -------------------------

def _conv3d_ref(x, w, b, relu):
    B, Cin, D, H, W = x.shape
    Cout, _, k, _, _ = w.shape
    Do, Ho, Wo = D - k + 1, H - k + 1, W - k + 1
    out = jnp.broadcast_to(b.reshape(1, Cout, 1, 1, 1), (B, Cout, Do, Ho, Wo))
    for ci in range(Cin):
        for kd in range(k):
            for kh in range(k):
                for kw in range(k):
                    slab = x[:, ci, kd:kd + Do, kh:kh + Ho, kw:kw + Wo]
                    out = out + slab[:, None] * w[:, ci, kd, kh, kw].reshape(1, Cout, 1, 1, 1)
    return jnp.maximum(out, 0.0) if relu else out


# ------------------------- main -------------------------

if __name__ == "__main__":
    # Small, structure-preserving configuration of MomentumPredictor:
    #   img_size=(2,1,16,16,16), conv_layers=[(3,2,2),(3,2,2)], mlp_hidden=[64,32,64]
    conv_layers = [(3, 2, 2), (3, 2, 2)]
    mlp_hidden = [64, 32, 64]
    img_size = (2, 1, 16, 16, 16)

    key = jax.random.PRNGKey(0)
    pkey, xkey = jax.random.split(key)
    params = init_params(pkey, img_size, conv_layers, mlp_hidden, out_channels=3)
    x = jax.random.normal(xkey, img_size, jnp.float32)

    # --- self-checks: fused conv kernel and pool kernel vs pure-jnp references ---
    w0, b0 = params["down"][0]
    a1 = jax.block_until_ready(jax.jit(functools.partial(conv3d, relu=True))(x, w0, b0))
    a1_ref = _conv3d_ref(x, w0, b0, True)
    assert float(jnp.max(jnp.abs(a1 - a1_ref))) < 1e-4

    p1, _ = jax.jit(pallas_maxpool2)(a1)
    Bc, Cc, Dc, Hc, Wc = a1.shape
    Dp, Hp, Wp = Dc // 2, Hc // 2, Wc // 2
    p1_ref = a1[:, :, :2 * Dp, :2 * Hp, :2 * Wp].reshape(
        Bc, Cc, Dp, 2, Hp, 2, Wp, 2).max(axis=(3, 5, 7))
    assert float(jnp.max(jnp.abs(p1 - p1_ref))) < 1e-6

    # --- full forward ---
    fwd = jax.jit(functools.partial(momentum_predictor_forward, conv_layers=conv_layers))
    out = jax.block_until_ready(fwd(params, x))

    assert out.shape == (img_size[0], 3, img_size[2], img_size[3], img_size[4]), out.shape
    assert bool(jnp.all(jnp.isfinite(out)))
    # Note: the module zeroes the final ConvTranspose3d at init (last_layer_scale=0.0),
    # so the forward output at init is all zeros by construction — reproduced here.
    print("KERNEL_OK")
</pallas_src>

<mosaic_0001>
module attributes {stable_mosaic.version = 11 : i64} {
  func.func @_conv3d_kernel(%arg0: i32, %arg1: memref<1x1x16x16x16xf32, #tpu.memory_space<vmem>>, %arg2: memref<54xf32, #tpu.memory_space<smem>>, %arg3: memref<2xf32, #tpu.memory_space<smem>>, %arg4: memref<1x2x14x14x14xf32, #tpu.memory_space<vmem>>) attributes {dimension_semantics = [#tpu.dimension_semantics<parallel>], iteration_bounds = array<i64: 2>, scalar_prefetch = 0 : i64, scratch_operands = 0 : i64, tpu.core_type = #tpu.core_type<tc>, window_params = [{transform_indices = @transform_0, window_bounds = array<i64: 1, 1, 16, 16, 16>}, {transform_indices = @transform_1, window_bounds = array<i64: 54>}, {transform_indices = @transform_2, window_bounds = array<i64: 2>}, {transform_indices = @transform_3, window_bounds = array<i64: 1, 2, 14, 14, 14>}]} {
    %c0_i32 = arith.constant 0 : i32
    %c14_i32 = arith.constant 14 : i32
    %0 = arith.addi %c0_i32, %c14_i32 : i32
    %c1_i32 = arith.constant 1 : i32
    scf.for %arg5 = %c0_i32 to %0 step %c1_i32  : i32 {
      %c0_i32_1 = arith.constant 0 : i32
      %1 = arith.addi %arg5, %c0_i32_1 : i32
      %c0 = arith.constant 0 : index
      %c0_2 = arith.constant 0 : index
      %2 = arith.index_cast %1 : i32 to index
      %c0_3 = arith.constant 0 : index
      %c0_4 = arith.constant 0 : index
      %3 = vector.load %arg1[%c0, %c0_2, %2, %c0_3, %c0_4] : memref<1x1x16x16x16xf32, #tpu.memory_space<vmem>>, vector<1x1x1x14x14xf32>
      %4 = vector.shape_cast %3 : vector<1x1x1x14x14xf32> to vector<14x14xf32>
      %c0_5 = arith.constant 0 : index
      %5 = memref.load %arg2[%c0_5] : memref<54xf32, #tpu.memory_space<smem>>
      %6 = vector.broadcast %5 : f32 to vector<14x14xf32>
      %7 = arith.mulf %4, %6 : vector<14x14xf32>
      %c27 = arith.constant 27 : index
      %8 = memref.load %arg2[%c27] : memref<54xf32, #tpu.memory_space<smem>>
      %9 = vector.broadcast %8 : f32 to vector<14x14xf32>
      %10 = arith.mulf %4, %9 : vector<14x14xf32>
      %c0_i32_6 = arith.constant 0 : i32
      %11 = arith.addi %arg5, %c0_i32_6 : i32
      %c0_7 = arith.constant 0 : index
      %c0_8 = arith.constant 0 : index
      %12 = arith.index_cast %11 : i32 to index
      %c0_9 = arith.constant 0 : index
      %c1 = arith.constant 1 : index
      %13 = vector.load %arg1[%c0_7, %c0_8, %12, %c0_9, %c1] : memref<1x1x16x16x16xf32, #tpu.memory_space<vmem>>, vector<1x1x1x14x14xf32>
      %14 = vector.shape_cast %13 : vector<1x1x1x14x14xf32> to vector<14x14xf32>
      %c1_10 = arith.constant 1 : index
      %15 = memref.load %arg2[%c1_10] : memref<54xf32, #tpu.memory_space<smem>>
      %16 = vector.broadcast %15 : f32 to vector<14x14xf32>
      %17 = arith.mulf %14, %16 : vector<14x14xf32>
      %18 = arith.addf %7, %17 : vector<14x14xf32>
      %c28 = arith.constant 28 : index
      %19 = memref.load %arg2[%c28] : memref<54xf32, #tpu.memory_space<smem>>
      %20 = vector.broadcast %19 : f32 to vector<14x14xf32>
      %21 = arith.mulf %14, %20 : vector<14x14xf32>
      %22 = arith.addf %10, %21 : vector<14x14xf32>
      %c0_i32_11 = arith.constant 0 : i32
      %23 = arith.addi %arg5, %c0_i32_11 : i32
      %c0_12 = arith.constant 0 : index
      %c0_13 = arith.constant 0 : index
      %24 = arith.index_cast %23 : i32 to index
      %c0_14 = arith.constant 0 : index
      %c2 = arith.constant 2 : index
      %25 = vector.load %arg1[%c0_12, %c0_13, %24, %c0_14, %c2] : memref<1x1x16x16x16xf32, #tpu.memory_space<vmem>>, vector<1x1x1x14x14xf32>
      %26 = vector.shape_cast %25 : vector<1x1x1x14x14xf32> to vector<14x14xf32>
      %c2_15 = arith.constant 2 : index
      %27 = memref.load %arg2[%c2_15] : memref<54xf32, #tpu.memory_space<smem>>
      %28 = vector.broadcast %27 : f32 to vector<14x14xf32>
      %29 = arith.mulf %26, %28 : vector<14x14xf32>
      %30 = arith.addf %18, %29 : vector<14x14xf32>
      %c29 = arith.constant 29 : index
      %31 = memref.load %arg2[%c29] : memref<54xf32, #tpu.memory_space<smem>>
      %32 = vector.broadcast %31 : f32 to vector<14x14xf32>
      %33 = arith.mulf %26, %32 : vector<14x14xf32>
      %34 = arith.addf %22, %33 : vector<14x14xf32>
      %c0_i32_16 = arith.constant 0 : i32
      %35 = arith.addi %arg5, %c0_i32_16 : i32
      %c0_17 = arith.constant 0 : index
      %c0_18 = arith.constant 0 : index
      %36 = arith.index_cast %35 : i32 to index
      %c1_19 = arith.constant 1 : index
      %c0_20 = arith.constant 0 : index
      %37 = vector.load %arg1[%c0_17, %c0_18, %36, %c1_19, %c0_20] : memref<1x1x16x16x16xf32, #tpu.memory_space<vmem>>, vector<1x1x1x14x14xf32>
      %38 = vector.shape_cast %37 : vector<1x1x1x14x14xf32> to vector<14x14xf32>
      %c3 = arith.constant 3 : index
      %39 = memref.load %arg2[%c3] : memref<54xf32, #tpu.memory_space<smem>>
      %40 = vector.broadcast %39 : f32 to vector<14x14xf32>
      %41 = arith.mulf %38, %40 : vector<14x14xf32>
      %42 = arith.addf %30, %41 : vector<14x14xf32>
      %c30 = arith.constant 30 : index
      %43 = memref.load %arg2[%c30] : memref<54xf32, #tpu.memory_space<smem>>
      %44 = vector.broadcast %43 : f32 to vector<14x14xf32>
      %45 = arith.mulf %38, %44 : vector<14x14xf32>
      %46 = arith.addf %34, %45 : vector<14x14xf32>
      %c0_i32_21 = arith.constant 0 : i32
      %47 = arith.addi %arg5, %c0_i32_21 : i32
      %c0_22 = arith.constant 0 : index
      %c0_23 = arith.constant 0 : index
      %48 = arith.index_cast %47 : i32 to index
      %c1_24 = arith.constant 1 : index
      %c1_25 = arith.constant 1 : index
      %49 = vector.load %arg1[%c0_22, %c0_23, %48, %c1_24, %c1_25] : memref<1x1x16x16x16xf32, #tpu.memory_space<vmem>>, vector<1x1x1x14x14xf32>
      %50 = vector.shape_cast %49 : vector<1x1x1x14x14xf32> to vector<14x14xf32>
      %c4 = arith.constant 4 : index
      %51 = memref.load %arg2[%c4] : memref<54xf32, #tpu.memory_space<smem>>
      %52 = vector.broadcast %51 : f32 to vector<14x14xf32>
      %53 = arith.mulf %50, %52 : vector<14x14xf32>
      %54 = arith.addf %42, %53 : vector<14x14xf32>
      %c31 = arith.constant 31 : index
      %55 = memref.load %arg2[%c31] : memref<54xf32, #tpu.memory_space<smem>>
      %56 = vector.broadcast %55 : f32 to vector<14x14xf32>
      %57 = arith.mulf %50, %56 : vector<14x14xf32>
      %58 = arith.addf %46, %57 : vector<14x14xf32>
      %c0_i32_26 = arith.constant 0 : i32
      %59 = arith.addi %arg5, %c0_i32_26 : i32
      %c0_27 = arith.constant 0 : index
      %c0_28 = arith.constant 0 : index
      %60 = arith.index_cast %59 : i32 to index
      %c1_29 = arith.constant 1 : index
      %c2_30 = arith.constant 2 : index
      %61 = vector.load %arg1[%c0_27, %c0_28, %60, %c1_29, %c2_30] : memref<1x1x16x16x16xf32, #tpu.memory_space<vmem>>, vector<1x1x1x14x14xf32>
      %62 = vector.shape_cast %61 : vector<1x1x1x14x14xf32> to vector<14x14xf32>
      %c5 = arith.constant 5 : index
      %63 = memref.load %arg2[%c5] : memref<54xf32, #tpu.memory_space<smem>>
      %64 = vector.broadcast %63 : f32 to vector<14x14xf32>
      %65 = arith.mulf %62, %64 : vector<14x14xf32>
      %66 = arith.addf %54, %65 : vector<14x14xf32>
      %c32 = arith.constant 32 : index
      %67 = memref.load %arg2[%c32] : memref<54xf32, #tpu.memory_space<smem>>
      %68 = vector.broadcast %67 : f32 to vector<14x14xf32>
      %69 = arith.mulf %62, %68 : vector<14x14xf32>
      %70 = arith.addf %58, %69 : vector<14x14xf32>
      %c0_i32_31 = arith.constant 0 : i32
      %71 = arith.addi %arg5, %c0_i32_31 : i32
      %c0_32 = arith.constant 0 : index
      %c0_33 = arith.constant 0 : index
      %72 = arith.index_cast %71 : i32 to index
      %c2_34 = arith.constant 2 : index
      %c0_35 = arith.constant 0 : index
      %73 = vector.load %arg1[%c0_32, %c0_33, %72, %c2_34, %c0_35] : memref<1x1x16x16x16xf32, #tpu.memory_space<vmem>>, vector<1x1x1x14x14xf32>
      %74 = vector.shape_cast %73 : vector<1x1x1x14x14xf32> to vector<14x14xf32>
      %c6 = arith.constant 6 : index
      %75 = memref.load %arg2[%c6] : memref<54xf32, #tpu.memory_space<smem>>
      %76 = vector.broadcast %75 : f32 to vector<14x14xf32>
      %77 = arith.mulf %74, %76 : vector<14x14xf32>
      %78 = arith.addf %66, %77 : vector<14x14xf32>
      %c33 = arith.constant 33 : index
      %79 = memref.load %arg2[%c33] : memref<54xf32, #tpu.memory_space<smem>>
      %80 = vector.broadcast %79 : f32 to vector<14x14xf32>
      %81 = arith.mulf %74, %80 : vector<14x14xf32>
      %82 = arith.addf %70, %81 : vector<14x14xf32>
      %c0_i32_36 = arith.constant 0 : i32
      %83 = arith.addi %arg5, %c0_i32_36 : i32
      %c0_37 = arith.constant 0 : index
      %c0_38 = arith.constant 0 : index
      %84 = arith.index_cast %83 : i32 to index
      %c2_39 = arith.constant 2 : index
      %c1_40 = arith.constant 1 : index
      %85 = vector.load %arg1[%c0_37, %c0_38, %84, %c2_39, %c1_40] : memref<1x1x16x16x16xf32, #tpu.memory_space<vmem>>, vector<1x1x1x14x14xf32>
      %86 = vector.shape_cast %85 : vector<1x1x1x14x14xf32> to vector<14x14xf32>
      %c7 = arith.constant 7 : index
      %87 = memref.load %arg2[%c7] : memref<54xf32, #tpu.memory_space<smem>>
      %88 = vector.broadcast %87 : f32 to vector<14x14xf32>
      %89 = arith.mulf %86, %88 : vector<14x14xf32>
      %90 = arith.addf %78, %89 : vector<14x14xf32>
      %c34 = arith.constant 34 : index
      %91 = memref.load %arg2[%c34] : memref<54xf32, #tpu.memory_space<smem>>
      %92 = vector.broadcast %91 : f32 to vector<14x14xf32>
      %93 = arith.mulf %86, %92 : vector<14x14xf32>
      %94 = arith.addf %82, %93 : vector<14x14xf32>
      %c0_i32_41 = arith.constant 0 : i32
      %95 = arith.addi %arg5, %c0_i32_41 : i32
      %c0_42 = arith.constant 0 : index
      %c0_43 = arith.constant 0 : index
      %96 = arith.index_cast %95 : i32 to index
      %c2_44 = arith.constant 2 : index
      %c2_45 = arith.constant 2 : index
      %97 = vector.load %arg1[%c0_42, %c0_43, %96, %c2_44, %c2_45] : memref<1x1x16x16x16xf32, #tpu.memory_space<vmem>>, vector<1x1x1x14x14xf32>
      %98 = vector.shape_cast %97 : vector<1x1x1x14x14xf32> to vector<14x14xf32>
      %c8 = arith.constant 8 : index
      %99 = memref.load %arg2[%c8] : memref<54xf32, #tpu.memory_space<smem>>
      %100 = vector.broadcast %99 : f32 to vector<14x14xf32>
      %101 = arith.mulf %98, %100 : vector<14x14xf32>
      %102 = arith.addf %90, %101 : vector<14x14xf32>
      %c35 = arith.constant 35 : index
      %103 = memref.load %arg2[%c35] : memref<54xf32, #tpu.memory_space<smem>>
      %104 = vector.broadcast %103 : f32 to vector<14x14xf32>
      %105 = arith.mulf %98, %104 : vector<14x14xf32>
      %106 = arith.addf %94, %105 : vector<14x14xf32>
      %c1_i32_46 = arith.constant 1 : i32
      %107 = arith.addi %arg5, %c1_i32_46 : i32
      %c0_47 = arith.constant 0 : index
      %c0_48 = arith.constant 0 : index
      %108 = arith.index_cast %107 : i32 to index
      %c0_49 = arith.constant 0 : index
      %c0_50 = arith.constant 0 : index
      %109 = vector.load %arg1[%c0_47, %c0_48, %108, %c0_49, %c0_50] : memref<1x1x16x16x16xf32, #tpu.memory_space<vmem>>, vector<1x1x1x14x14xf32>
      %110 = vector.shape_cast %109 : vector<1x1x1x14x14xf32> to vector<14x14xf32>
      %c9 = arith.constant 9 : index
      %111 = memref.load %arg2[%c9] : memref<54xf32, #tpu.memory_space<smem>>
      %112 = vector.broadcast %111 : f32 to vector<14x14xf32>
      %113 = arith.mulf %110, %112 : vector<14x14xf32>
      %114 = arith.addf %102, %113 : vector<14x14xf32>
      %c36 = arith.constant 36 : index
      %115 = memref.load %arg2[%c36] : memref<54xf32, #tpu.memory_space<smem>>
      %116 = vector.broadcast %115 : f32 to vector<14x14xf32>
      %117 = arith.mulf %110, %116 : vector<14x14xf32>
      %118 = arith.addf %106, %117 : vector<14x14xf32>
      %c1_i32_51 = arith.constant 1 : i32
      %119 = arith.addi %arg5, %c1_i32_51 : i32
      %c0_52 = arith.constant 0 : index
      %c0_53 = arith.constant 0 : index
      %120 = arith.index_cast %119 : i32 to index
      %c0_54 = arith.constant 0 : index
      %c1_55 = arith.constant 1 : index
      %121 = vector.load %arg1[%c0_52, %c0_53, %120, %c0_54, %c1_55] : memref<1x1x16x16x16xf32, #tpu.memory_space<vmem>>, vector<1x1x1x14x14xf32>
      %122 = vector.shape_cast %121 : vector<1x1x1x14x14xf32> to vector<14x14xf32>
      %c10 = arith.constant 10 : index
      %123 = memref.load %arg2[%c10] : memref<54xf32, #tpu.memory_space<smem>>
      %124 = vector.broadcast %123 : f32 to vector<14x14xf32>
      %125 = arith.mulf %122, %124 : vector<14x14xf32>
      %126 = arith.addf %114, %125 : vector<14x14xf32>
      %c37 = arith.constant 37 : index
      %127 = memref.load %arg2[%c37] : memref<54xf32, #tpu.memory_space<smem>>
      %128 = vector.broadcast %127 : f32 to vector<14x14xf32>
      %129 = arith.mulf %122, %128 : vector<14x14xf32>
      %130 = arith.addf %118, %129 : vector<14x14xf32>
      %c1_i32_56 = arith.constant 1 : i32
      %131 = arith.addi %arg5, %c1_i32_56 : i32
      %c0_57 = arith.constant 0 : index
      %c0_58 = arith.constant 0 : index
      %132 = arith.index_cast %131 : i32 to index
      %c0_59 = arith.constant 0 : index
      %c2_60 = arith.constant 2 : index
      %133 = vector.load %arg1[%c0_57, %c0_58, %132, %c0_59, %c2_60] : memref<1x1x16x16x16xf32, #tpu.memory_space<vmem>>, vector<1x1x1x14x14xf32>
      %134 = vector.shape_cast %133 : vector<1x1x1x14x14xf32> to vector<14x14xf32>
      %c11 = arith.constant 11 : index
      %135 = memref.load %arg2[%c11] : memref<54xf32, #tpu.memory_space<smem>>
      %136 = vector.broadcast %135 : f32 to vector<14x14xf32>
      %137 = arith.mulf %134, %136 : vector<14x14xf32>
      %138 = arith.addf %126, %137 : vector<14x14xf32>
      %c38 = arith.constant 38 : index
      %139 = memref.load %arg2[%c38] : memref<54xf32, #tpu.memory_space<smem>>
      %140 = vector.broadcast %139 : f32 to vector<14x14xf32>
      %141 = arith.mulf %134, %140 : vector<14x14xf32>
      %142 = arith.addf %130, %141 : vector<14x14xf32>
      %c1_i32_61 = arith.constant 1 : i32
      %143 = arith.addi %arg5, %c1_i32_61 : i32
      %c0_62 = arith.constant 0 : index
      %c0_63 = arith.constant 0 : index
      %144 = arith.index_cast %143 : i32 to index
      %c1_64 = arith.constant 1 : index
      %c0_65 = arith.constant 0 : index
      %145 = vector.load %arg1[%c0_62, %c0_63, %144, %c1_64, %c0_65] : memref<1x1x16x16x16xf32, #tpu.memory_space<vmem>>, vector<1x1x1x14x14xf32>
      %146 = vector.shape_cast %145 : vector<1x1x1x14x14xf32> to vector<14x14xf32>
      %c12 = arith.constant 12 : index
      %147 = memref.load %arg2[%c12] : memref<54xf32, #tpu.memory_space<smem>>
      %148 = vector.broadcast %147 : f32 to vector<14x14xf32>
      %149 = arith.mulf %146, %148 : vector<14x14xf32>
      %150 = arith.addf %138, %149 : vector<14x14xf32>
      %c39 = arith.constant 39 : index
      %151 = memref.load %arg2[%c39] : memref<54xf32, #tpu.memory_space<smem>>
      %152 = vector.broadcast %151 : f32 to vector<14x14xf32>
      %153 = arith.mulf %146, %152 : vector<14x14xf32>
      %154 = arith.addf %142, %153 : vector<14x14xf32>
      %c1_i32_66 = arith.constant 1 : i32
      %155 = arith.addi %arg5, %c1_i32_66 : i32
      %c0_67 = arith.constant 0 : index
      %c0_68 = arith.constant 0 : index
      %156 = arith.index_cast %155 : i32 to index
      %c1_69 = arith.constant 1 : index
      %c1_70 = arith.constant 1 : index
      %157 = vector.load %arg1[%c0_67, %c0_68, %156, %c1_69, %c1_70] : memref<1x1x16x16x16xf32, #tpu.memory_space<vmem>>, vector<1x1x1x14x14xf32>
      %158 = vector.shape_cast %157 : vector<1x1x1x14x14xf32> to vector<14x14xf32>
      %c13 = arith.constant 13 : index
      %159 = memref.load %arg2[%c13] : memref<54xf32, #tpu.memory_space<smem>>
      %160 = vector.broadcast %159 : f32 to vector<14x14xf32>
      %161 = arith.mulf %158, %160 : vector<14x14xf32>
      %162 = arith.addf %150, %161 : vector<14x14xf32>
      %c40 = arith.constant 40 : index
      %163 = memref.load %arg2[%c40] : memref<54xf32, #tpu.memory_space<smem>>
      %164 = vector.broadcast %163 : f32 to vector<14x14xf32>
      %165 = arith.mulf %158, %164 : vector<14x14xf32>
      %166 = arith.addf %154, %165 : vector<14x14xf32>
      %c1_i32_71 = arith.constant 1 : i32
      %167 = arith.addi %arg5, %c1_i32_71 : i32
      %c0_72 = arith.constant 0 : index
      %c0_73 = arith.constant 0 : index
      %168 = arith.index_cast %167 : i32 to index
      %c1_74 = arith.constant 1 : index
      %c2_75 = arith.constant 2 : index
      %169 = vector.load %arg1[%c0_72, %c0_73, %168, %c1_74, %c2_75] : memref<1x1x16x16x16xf32, #tpu.memory_space<vmem>>, vector<1x1x1x14x14xf32>
      %170 = vector.shape_cast %169 : vector<1x1x1x14x14xf32> to vector<14x14xf32>
      %c14 = arith.constant 14 : index
      %171 = memref.load %arg2[%c14] : memref<54xf32, #tpu.memory_space<smem>>
      %172 = vector.broadcast %171 : f32 to vector<14x14xf32>
      %173 = arith.mulf %170, %172 : vector<14x14xf32>
      %174 = arith.addf %162, %173 : vector<14x14xf32>
      %c41 = arith.constant 41 : index
      %175 = memref.load %arg2[%c41] : memref<54xf32, #tpu.memory_space<smem>>
      %176 = vector.broadcast %175 : f32 to vector<14x14xf32>
      %177 = arith.mulf %170, %176 : vector<14x14xf32>
      %178 = arith.addf %166, %177 : vector<14x14xf32>
      %c1_i32_76 = arith.constant 1 : i32
      %179 = arith.addi %arg5, %c1_i32_76 : i32
      %c0_77 = arith.constant 0 : index
      %c0_78 = arith.constant 0 : index
      %180 = arith.index_cast %179 : i32 to index
      %c2_79 = arith.constant 2 : index
      %c0_80 = arith.constant 0 : index
      %181 = vector.load %arg1[%c0_77, %c0_78, %180, %c2_79, %c0_80] : memref<1x1x16x16x16xf32, #tpu.memory_space<vmem>>, vector<1x1x1x14x14xf32>
      %182 = vector.shape_cast %181 : vector<1x1x1x14x14xf32> to vector<14x14xf32>
      %c15 = arith.constant 15 : index
      %183 = memref.load %arg2[%c15] : memref<54xf32, #tpu.memory_space<smem>>
      %184 = vector.broadcast %183 : f32 to vector<14x14xf32>
      %185 = arith.mulf %182, %184 : vector<14x14xf32>
      %186 = arith.addf %174, %185 : vector<14x14xf32>
      %c42 = arith.constant 42 : index
      %187 = memref.load %arg2[%c42] : memref<54xf32, #tpu.memory_space<smem>>
      %188 = vector.broadcast %187 : f32 to vector<14x14xf32>
      %189 = arith.mulf %182, %188 : vector<14x14xf32>
      %190 = arith.addf %178, %189 : vector<14x14xf32>
      %c1_i32_81 = arith.constant 1 : i32
      %191 = arith.addi %arg5, %c1_i32_81 : i32
      %c0_82 = arith.constant 0 : index
      %c0_83 = arith.constant 0 : index
      %192 = arith.index_cast %191 : i32 to index
      %c2_84 = arith.constant 2 : index
      %c1_85 = arith.constant 1 : index
      %193 = vector.load %arg1[%c0_82, %c0_83, %192, %c2_84, %c1_85] : memref<1x1x16x16x16xf32, #tpu.memory_space<vmem>>, vector<1x1x1x14x14xf32>
      %194 = vector.shape_cast %193 : vector<1x1x1x14x14xf32> to vector<14x14xf32>
      %c16 = arith.constant 16 : index
      %195 = memref.load %arg2[%c16] : memref<54xf32, #tpu.memory_space<smem>>
      %196 = vector.broadcast %195 : f32 to vector<14x14xf32>
      %197 = arith.mulf %194, %196 : vector<14x14xf32>
      %198 = arith.addf %186, %197 : vector<14x14xf32>
      %c43 = arith.constant 43 : index
      %199 = memref.load %arg2[%c43] : memref<54xf32, #tpu.memory_space<smem>>
      %200 = vector.broadcast %199 : f32 to vector<14x14xf32>
      %201 = arith.mulf %194, %200 : vector<14x14xf32>
      %202 = arith.addf %190, %201 : vector<14x14xf32>
      %c1_i32_86 = arith.constant 1 : i32
      %203 = arith.addi %arg5, %c1_i32_86 : i32
      %c0_87 = arith.constant 0 : index
      %c0_88 = arith.constant 0 : index
      %204 = arith.index_cast %203 : i32 to index
      %c2_89 = arith.constant 2 : index
      %c2_90 = arith.constant 2 : index
      %205 = vector.load %arg1[%c0_87, %c0_88, %204, %c2_89, %c2_90] : memref<1x1x16x16x16xf32, #tpu.memory_space<vmem>>, vector<1x1x1x14x14xf32>
      %206 = vector.shape_cast %205 : vector<1x1x1x14x14xf32> to vector<14x14xf32>
      %c17 = arith.constant 17 : index
      %207 = memref.load %arg2[%c17] : memref<54xf32, #tpu.memory_space<smem>>
      %208 = vector.broadcast %207 : f32 to vector<14x14xf32>
      %209 = arith.mulf %206, %208 : vector<14x14xf32>
      %210 = arith.addf %198, %209 : vector<14x14xf32>
      %c44 = arith.constant 44 : index
      %211 = memref.load %arg2[%c44] : memref<54xf32, #tpu.memory_space<smem>>
      %212 = vector.broadcast %211 : f32 to vector<14x14xf32>
      %213 = arith.mulf %206, %212 : vector<14x14xf32>
      %214 = arith.addf %202, %213 : vector<14x14xf32>
      %c2_i32 = arith.constant 2 : i32
      %215 = arith.addi %arg5, %c2_i32 : i32
      %c0_91 = arith.constant 0 : index
      %c0_92 = arith.constant 0 : index
      %216 = arith.index_cast %215 : i32 to index
      %c0_93 = arith.constant 0 : index
      %c0_94 = arith.constant 0 : index
      %217 = vector.load %arg1[%c0_91, %c0_92, %216, %c0_93, %c0_94] : memref<1x1x16x16x16xf32, #tpu.memory_space<vmem>>, vector<1x1x1x14x14xf32>
      %218 = vector.shape_cast %217 : vector<1x1x1x14x14xf32> to vector<14x14xf32>
      %c18 = arith.constant 18 : index
      %219 = memref.load %arg2[%c18] : memref<54xf32, #tpu.memory_space<smem>>
      %220 = vector.broadcast %219 : f32 to vector<14x14xf32>
      %221 = arith.mulf %218, %220 : vector<14x14xf32>
      %222 = arith.addf %210, %221 : vector<14x14xf32>
      %c45 = arith.constant 45 : index
      %223 = memref.load %arg2[%c45] : memref<54xf32, #tpu.memory_space<smem>>
      %224 = vector.broadcast %223 : f32 to vector<14x14xf32>
      %225 = arith.mulf %218, %224 : vector<14x14xf32>
      %226 = arith.addf %214, %225 : vector<14x14xf32>
      %c2_i32_95 = arith.constant 2 : i32
      %227 = arith.addi %arg5, %c2_i32_95 : i32
      %c0_96 = arith.constant 0 : index
      %c0_97 = arith.constant 0 : index
      %228 = arith.index_cast %227 : i32 to index
      %c0_98 = arith.constant 0 : index
      %c1_99 = arith.constant 1 : index
      %229 = vector.load %arg1[%c0_96, %c0_97, %228, %c0_98, %c1_99] : memref<1x1x16x16x16xf32, #tpu.memory_space<vmem>>, vector<1x1x1x14x14xf32>
      %230 = vector.shape_cast %229 : vector<1x1x1x14x14xf32> to vector<14x14xf32>
      %c19 = arith.constant 19 : index
      %231 = memref.load %arg2[%c19] : memref<54xf32, #tpu.memory_space<smem>>
      %232 = vector.broadcast %231 : f32 to vector<14x14xf32>
      %233 = arith.mulf %230, %232 : vector<14x14xf32>
      %234 = arith.addf %222, %233 : vector<14x14xf32>
      %c46 = arith.constant 46 : index
      %235 = memref.load %arg2[%c46] : memref<54xf32, #tpu.memory_space<smem>>
      %236 = vector.broadcast %235 : f32 to vector<14x14xf32>
      %237 = arith.mulf %230, %236 : vector<14x14xf32>
      %238 = arith.addf %226, %237 : vector<14x14xf32>
      %c2_i32_100 = arith.constant 2 : i32
      %239 = arith.addi %arg5, %c2_i32_100 : i32
      %c0_101 = arith.constant 0 : index
      %c0_102 = arith.constant 0 : index
      %240 = arith.index_cast %239 : i32 to index
      %c0_103 = arith.constant 0 : index
      %c2_104 = arith.constant 2 : index
      %241 = vector.load %arg1[%c0_101, %c0_102, %240, %c0_103, %c2_104] : memref<1x1x16x16x16xf32, #tpu.memory_space<vmem>>, vector<1x1x1x14x14xf32>
      %242 = vector.shape_cast %241 : vector<1x1x1x14x14xf32> to vector<14x14xf32>
      %c20 = arith.constant 20 : index
      %243 = memref.load %arg2[%c20] : memref<54xf32, #tpu.memory_space<smem>>
      %244 = vector.broadcast %243 : f32 to vector<14x14xf32>
      %245 = arith.mulf %242, %244 : vector<14x14xf32>
      %246 = arith.addf %234, %245 : vector<14x14xf32>
      %c47 = arith.constant 47 : index
      %247 = memref.load %arg2[%c47] : memref<54xf32, #tpu.memory_space<smem>>
      %248 = vector.broadcast %247 : f32 to vector<14x14xf32>
      %249 = arith.mulf %242, %248 : vector<14x14xf32>
      %250 = arith.addf %238, %249 : vector<14x14xf32>
      %c2_i32_105 = arith.constant 2 : i32
      %251 = arith.addi %arg5, %c2_i32_105 : i32
      %c0_106 = arith.constant 0 : index
      %c0_107 = arith.constant 0 : index
      %252 = arith.index_cast %251 : i32 to index
      %c1_108 = arith.constant 1 : index
      %c0_109 = arith.constant 0 : index
      %253 = vector.load %arg1[%c0_106, %c0_107, %252, %c1_108, %c0_109] : memref<1x1x16x16x16xf32, #tpu.memory_space<vmem>>, vector<1x1x1x14x14xf32>
      %254 = vector.shape_cast %253 : vector<1x1x1x14x14xf32> to vector<14x14xf32>
      %c21 = arith.constant 21 : index
      %255 = memref.load %arg2[%c21] : memref<54xf32, #tpu.memory_space<smem>>
      %256 = vector.broadcast %255 : f32 to vector<14x14xf32>
      %257 = arith.mulf %254, %256 : vector<14x14xf32>
      %258 = arith.addf %246, %257 : vector<14x14xf32>
      %c48 = arith.constant 48 : index
      %259 = memref.load %arg2[%c48] : memref<54xf32, #tpu.memory_space<smem>>
      %260 = vector.broadcast %259 : f32 to vector<14x14xf32>
      %261 = arith.mulf %254, %260 : vector<14x14xf32>
      %262 = arith.addf %250, %261 : vector<14x14xf32>
      %c2_i32_110 = arith.constant 2 : i32
      %263 = arith.addi %arg5, %c2_i32_110 : i32
      %c0_111 = arith.constant 0 : index
      %c0_112 = arith.constant 0 : index
      %264 = arith.index_cast %263 : i32 to index
      %c1_113 = arith.constant 1 : index
      %c1_114 = arith.constant 1 : index
      %265 = vector.load %arg1[%c0_111, %c0_112, %264, %c1_113, %c1_114] : memref<1x1x16x16x16xf32, #tpu.memory_space<vmem>>, vector<1x1x1x14x14xf32>
      %266 = vector.shape_cast %265 : vector<1x1x1x14x14xf32> to vector<14x14xf32>
      %c22 = arith.constant 22 : index
      %267 = memref.load %arg2[%c22] : memref<54xf32, #tpu.memory_space<smem>>
      %268 = vector.broadcast %267 : f32 to vector<14x14xf32>
      %269 = arith.mulf %266, %268 : vector<14x14xf32>
      %270 = arith.addf %258, %269 : vector<14x14xf32>
      %c49 = arith.constant 49 : index
      %271 = memref.load %arg2[%c49] : memref<54xf32, #tpu.memory_space<smem>>
      %272 = vector.broadcast %271 : f32 to vector<14x14xf32>
      %273 = arith.mulf %266, %272 : vector<14x14xf32>
      %274 = arith.addf %262, %273 : vector<14x14xf32>
      %c2_i32_115 = arith.constant 2 : i32
      %275 = arith.addi %arg5, %c2_i32_115 : i32
      %c0_116 = arith.constant 0 : index
      %c0_117 = arith.constant 0 : index
      %276 = arith.index_cast %275 : i32 to index
      %c1_118 = arith.constant 1 : index
      %c2_119 = arith.constant 2 : index
      %277 = vector.load %arg1[%c0_116, %c0_117, %276, %c1_118, %c2_119] : memref<1x1x16x16x16xf32, #tpu.memory_space<vmem>>, vector<1x1x1x14x14xf32>
      %278 = vector.shape_cast %277 : vector<1x1x1x14x14xf32> to vector<14x14xf32>
      %c23 = arith.constant 23 : index
      %279 = memref.load %arg2[%c23] : memref<54xf32, #tpu.memory_space<smem>>
      %280 = vector.broadcast %279 : f32 to vector<14x14xf32>
      %281 = arith.mulf %278, %280 : vector<14x14xf32>
      %282 = arith.addf %270, %281 : vector<14x14xf32>
      %c50 = arith.constant 50 : index
      %283 = memref.load %arg2[%c50] : memref<54xf32, #tpu.memory_space<smem>>
      %284 = vector.broadcast %283 : f32 to vector<14x14xf32>
      %285 = arith.mulf %278, %284 : vector<14x14xf32>
      %286 = arith.addf %274, %285 : vector<14x14xf32>
      %c2_i32_120 = arith.constant 2 : i32
      %287 = arith.addi %arg5, %c2_i32_120 : i32
      %c0_121 = arith.constant 0 : index
      %c0_122 = arith.constant 0 : index
      %288 = arith.index_cast %287 : i32 to index
      %c2_123 = arith.constant 2 : index
      %c0_124 = arith.constant 0 : index
      %289 = vector.load %arg1[%c0_121, %c0_122, %288, %c2_123, %c0_124] : memref<1x1x16x16x16xf32, #tpu.memory_space<vmem>>, vector<1x1x1x14x14xf32>
      %290 = vector.shape_cast %289 : vector<1x1x1x14x14xf32> to vector<14x14xf32>
      %c24 = arith.constant 24 : index
      %291 = memref.load %arg2[%c24] : memref<54xf32, #tpu.memory_space<smem>>
      %292 = vector.broadcast %291 : f32 to vector<14x14xf32>
      %293 = arith.mulf %290, %292 : vector<14x14xf32>
      %294 = arith.addf %282, %293 : vector<14x14xf32>
      %c51 = arith.constant 51 : index
      %295 = memref.load %arg2[%c51] : memref<54xf32, #tpu.memory_space<smem>>
      %296 = vector.broadcast %295 : f32 to vector<14x14xf32>
      %297 = arith.mulf %290, %296 : vector<14x14xf32>
      %298 = arith.addf %286, %297 : vector<14x14xf32>
      %c2_i32_125 = arith.constant 2 : i32
      %299 = arith.addi %arg5, %c2_i32_125 : i32
      %c0_126 = arith.constant 0 : index
      %c0_127 = arith.constant 0 : index
      %300 = arith.index_cast %299 : i32 to index
      %c2_128 = arith.constant 2 : index
      %c1_129 = arith.constant 1 : index
      %301 = vector.load %arg1[%c0_126, %c0_127, %300, %c2_128, %c1_129] : memref<1x1x16x16x16xf32, #tpu.memory_space<vmem>>, vector<1x1x1x14x14xf32>
      %302 = vector.shape_cast %301 : vector<1x1x1x14x14xf32> to vector<14x14xf32>
      %c25 = arith.constant 25 : index
      %303 = memref.load %arg2[%c25] : memref<54xf32, #tpu.memory_space<smem>>
      %304 = vector.broadcast %303 : f32 to vector<14x14xf32>
      %305 = arith.mulf %302, %304 : vector<14x14xf32>
      %306 = arith.addf %294, %305 : vector<14x14xf32>
      %c52 = arith.constant 52 : index
      %307 = memref.load %arg2[%c52] : memref<54xf32, #tpu.memory_space<smem>>
      %308 = vector.broadcast %307 : f32 to vector<14x14xf32>
      %309 = arith.mulf %302, %308 : vector<14x14xf32>
      %310 = arith.addf %298, %309 : vector<14x14xf32>
      %c2_i32_130 = arith.constant 2 : i32
      %311 = arith.addi %arg5, %c2_i32_130 : i32
      %c0_131 = arith.constant 0 : index
      %c0_132 = arith.constant 0 : index
      %312 = arith.index_cast %311 : i32 to index
      %c2_133 = arith.constant 2 : index
      %c2_134 = arith.constant 2 : index
      %313 = vector.load %arg1[%c0_131, %c0_132, %312, %c2_133, %c2_134] : memref<1x1x16x16x16xf32, #tpu.memory_space<vmem>>, vector<1x1x1x14x14xf32>
      %314 = vector.shape_cast %313 : vector<1x1x1x14x14xf32> to vector<14x14xf32>
      %c26 = arith.constant 26 : index
      %315 = memref.load %arg2[%c26] : memref<54xf32, #tpu.memory_space<smem>>
      %316 = vector.broadcast %315 : f32 to vector<14x14xf32>
      %317 = arith.mulf %314, %316 : vector<14x14xf32>
      %318 = arith.addf %306, %317 : vector<14x14xf32>
      %c53 = arith.constant 53 : index
      %319 = memref.load %arg2[%c53] : memref<54xf32, #tpu.memory_space<smem>>
      %320 = vector.broadcast %319 : f32 to vector<14x14xf32>
      %321 = arith.mulf %314, %320 : vector<14x14xf32>
      %322 = arith.addf %310, %321 : vector<14x14xf32>
      %c0_135 = arith.constant 0 : index
      %323 = memref.load %arg3[%c0_135] : memref<2xf32, #tpu.memory_space<smem>>
      %324 = vector.broadcast %323 : f32 to vector<14x14xf32>
      %325 = arith.addf %318, %324 : vector<14x14xf32>
      %cst = arith.constant 0.000000e+00 : f32
      %326 = vector.broadcast %cst : f32 to vector<14x14xf32>
      %327 = arith.maximumf %325, %326 : vector<14x14xf32>
      %c0_136 = arith.constant 0 : index
      %c0_137 = arith.constant 0 : index
      %328 = arith.index_cast %arg5 : i32 to index
      %c0_138 = arith.constant 0 : index
      %c0_139 = arith.constant 0 : index
      %329 = vector.load %arg4[%c0_136, %c0_137, %328, %c0_138, %c0_139] : memref<1x2x14x14x14xf32, #tpu.memory_space<vmem>>, vector<1x1x1x14x14xf32>
      %330 = vector.shape_cast %329 : vector<1x1x1x14x14xf32> to vector<14x14xf32>
      %331 = vector.shape_cast %327 : vector<14x14xf32> to vector<1x1x1x14x14xf32>
      tpu.vector_store %arg4[%c0_136, %c0_137, %328, %c0_138, %c0_139], %331 {strides = array<i32>} : memref<1x2x14x14x14xf32, #tpu.memory_space<vmem>>, vector<1x1x1x14x14xf32>,
      %c1_140 = arith.constant 1 : index
      %332 = memref.load %arg3[%c1_140] : memref<2xf32, #tpu.memory_space<smem>>
      %333 = vector.broadcast %332 : f32 to vector<14x14xf32>
      %334 = arith.addf %322, %333 : vector<14x14xf32>
      %cst_141 = arith.constant 0.000000e+00 : f32
      %335 = vector.broadcast %cst_141 : f32 to vector<14x14xf32>
      %336 = arith.maximumf %334, %335 : vector<14x14xf32>
      %c0_142 = arith.constant 0 : index
      %c1_143 = arith.constant 1 : index
      %337 = arith.index_cast %arg5 : i32 to index
      %c0_144 = arith.constant 0 : index
      %c0_145 = arith.constant 0 : index
      %338 = vector.load %arg4[%c0_142, %c1_143, %337, %c0_144, %c0_145] : memref<1x2x14x14x14xf32, #tpu.memory_space<vmem>>, vector<1x1x1x14x14xf32>
      %339 = vector.shape_cast %338 : vector<1x1x1x14x14xf32> to vector<14x14xf32>
      %340 = vector.shape_cast %336 : vector<14x14xf32> to vector<1x1x1x14x14xf32>
      tpu.vector_store %arg4[%c0_142, %c1_143, %337, %c0_144, %c0_145], %340 {strides = array<i32>} : memref<1x2x14x14x14xf32, #tpu.memory_space<vmem>>, vector<1x1x1x14x14xf32>,
    }
    %c14_i32_0 = arith.constant 14 : i32
    return
  }
  func.func @transform_0(%arg0: i32) -> (i32, i32, i32, i32, i32) {
    %c0_i32 = arith.constant 0 : i32
    %c0_i32_0 = arith.constant 0 : i32
    %c0_i32_1 = arith.constant 0 : i32
    %c0_i32_2 = arith.constant 0 : i32
    %c0_i32_3 = arith.constant 0 : i32
    return %arg0, %c0_i32, %c0_i32_0, %c0_i32_1, %c0_i32_2 : i32, i32, i32, i32, i32
  }
  func.func @transform_1(%arg0: i32) -> i32 {
    %c0_i32 = arith.constant 0 : i32
    %c0_i32_0 = arith.constant 0 : i32
    return %c0_i32 : i32
  }
  func.func @transform_2(%arg0: i32) -> i32 {
    %c0_i32 = arith.constant 0 : i32
    %c0_i32_0 = arith.constant 0 : i32
    return %c0_i32 : i32
  }
  func.func @transform_3(%arg0: i32) -> (i32, i32, i32, i32, i32) {
    %c0_i32 = arith.constant 0 : i32
    %c0_i32_0 = arith.constant 0 : i32
    %c0_i32_1 = arith.constant 0 : i32
    %c0_i32_2 = arith.constant 0 : i32
    %c0_i32_3 = arith.constant 0 : i32
    return %arg0, %c0_i32, %c0_i32_0, %c0_i32_1, %c0_i32_2 : i32, i32, i32, i32, i32
  }
}

</mosaic_0001>

<bundles_post_ra>
// kernel: conv3d.1
= control target key start
LH: loop header
LB: loop body
LE: loop exit
PB: predicated region body
PF: predicated region fallthrough
CT: control target
= control target key end

     0   :  { %8 = vsyncpa [#allocation3], 0  ;;  %s1761_s0 = inlined_call_operand.hbm [shape: f32[2,1,16,16,16], index: 0, kind: input, shape index: {}]   ;;  %s1762_s1 = inlined_call_operand.vmem [shape: f32[54], index: 1, kind: input, shape index: {}]   ;;  %s1763_s2 = inlined_call_operand.vmem [shape: f32[2], index: 2, kind: input, shape index: {}]   ;;  %s1764_s3 = inlined_call_operand.vmem [shape: f32[2,2,14,14,14], index: 3, kind: output, shape index: {}]  }
   0x1   :  { %10 = vsyncpa [#allocation3 + $0x1], 0 }
   0x2   :  { %11 = vsyncpa [#allocation4], 0 }
   0x3   :  { %12 = vsyncpa [#allocation7], 0  ;;  %s1287_s12 = smov 0   ;;  %s1289_s13 = smov 0  }
   0x4   :  { %s1291_s14 = smov 0   ;;  %s1293_s15 = smov 0  }
   0x5 LB: > { %s1306_s16 = sadd.s32 4294967295, %s1255_s15   ;;  %s1309_s17 = sadd.s32 1, %s1255_s15   ;;  %s1255_s15 = sphi %s1293_s15, %s1772_s15   ;;  %s1251_s14 = sphi %s1291_s14, %s1771_s14   ;;  %s1247_s13 = sphi %s1289_s13, %s1770_s13   ;;  %s1243_s12 = sphi %s1287_s12, %s1769_s12  }
   0x6   : > { %s22_s18 = ssub.s32 %s1255_s15, %s1309_s17  ;;  %s25_s19 = sadd.s32 1, %s1251_s14 }
   0x7   : > { %p23_p0 = scmp.eq.s32.totalorder %s22_s18, 0  ;;  %p32_p1 = scmp.ne.s32.totalorder %s1251_s14, %s1247_s13 }
   0x8   : > { %p33_p2 = scmp.eq.s32.totalorder %s1255_s15, 0  ;;  %p38_p3 = scmp.ne.s32.totalorder %s1247_s13, %s1243_s12 }
   0x9   : > { %s1319_s20 = scalar_select %p23_p0, %s1251_s14, %s25_s19  }
   0xa   : > { %p1321_p4 = por %p33_p2, %p32_p1  ;;  %p39_p5 = scmp.eq.s32.totalorder %s1306_s16, 0 }
   0xb   : > { %p989_p6 = scmp.ge.s32.totalorder %s1255_s15, 1  ;;  %p117_p7 = scmp.lt.s32.totalorder %s1255_s15, 3 }
   0xc   : > { %p1330_p8 = por %p39_p5, %p38_p3  ;;  %s129_s26 = sshll.u32 %s1762_s1, 4  ;;  %s130_s26 = int_to_ptr.vmem [resolvable:$true] %s129_s26 }
   0xd   : > { %p1334_p9 = pnand %p989_p6, %p117_p7  ;;  %p1100_p11 = scmp.lt.s32.totalorder %s1255_s15, 2 }
   0xe   : > { %s139_s29 = sshll.u32 %s1763_s2, 4  ;;  %s150_s4 = sand.u32 1, %s1251_s14   ;;  %s140_s29 = int_to_ptr.vmem [resolvable:$true] %s139_s29 }
   0xf   : > { %p1087_p10 = pneg %p1334_p9  ;;  %p1351_p13 = pnand %p1100_p11, %p1321_p4 }
  0x10   : > { %s1261_s5 = smov [#allocation5]   ;;  %s1262_s6 = smov [#allocation6]  }
  0x11   : > { %p1088_p12 = pnand %p1087_p10, %p39_p5  ;;  %s993_s7 = sshll.u32 %s150_s4, 8 }
  0x12   : > { %s1075_s8 = sshll.u32 %s1255_s15, 8  ;;  %s154_s18 = scalar_lea.vmem [#allocation2], %s993_s7 }
  0x13   : > { %1090 = dma.vmem_to_smem (!%p1088_p12), %s130_s26, 16, %s1261_s5, [#allocation4]  }
  0x14   : > { %1093 = dma.vmem_to_smem (!%p1088_p12), %s140_s29, 16, %s1262_s6, [#allocation7]  }
  0x15   : > { %s159_s11 = scalar_lea.hbm %s1761_s0, %s1075_s8  ;;  %s162_s19 = sshll.u32 %s154_s18, 4  ;;  %s163_s19 = int_to_ptr.vmem [resolvable:$true] %s162_s19 }
  0x16   : > { %s160_s12 = sshll.u32 %s159_s11, 4  ;;  %s151_s21 = scalar_lea.sflag [#allocation3], %s150_s4  ;;  %s161_s12 = int_to_ptr.hbm [resolvable:$true] %s160_s12 }
  0x17   : > { %s1179_s24 = sshra.s32 %s161_s12, 4  ;;  %p1183_p1 = pneg %p1351_p13  ;;  %s1180_s24 = int_to_ptr.hbm [resolvable:$true] %s1179_s24 }
  0x18   : > { %s1181_s25 = scalar_lea.hbm %s1180_s24, 256  ;;  %s1186_s27 = scalar_lea.hbm %s1761_s0, 512 }
  0x19   : > { %p1182_p0 = scmp.ne.s32.totalorder %s1180_s24, %s1181_s25  ;;  %p1187_p4 = scmp.lt.s32.totalorder %s1180_s24, %s1761_s0 }
  0x1a   : > { %p1188_p6 = scmp.lt.s32.totalorder %s1186_s27, %s1181_s25 }
  0x1b   : > { %p1184_p2 = pnand %p1183_p1, %p1182_p0 }
  0x1c   : > { %p1189_p7 = por %p1188_p6, %p1187_p4 }
  0x1d   : > { %p1185_p3 = pneg %p1184_p2 }
  0x1f   : > { %p1190_p10 = pnand %p1189_p7, %p1185_p3 }
  0x21   : > { %1193 = shalt.err (!%p1190_p10)
}
  0x22   : > { %s1263_s4 = smov 128   ;;  %s1264_s5 = smov 8  }
  0x23   : > { %1097 = dma.hbm_to_vmem [thread:$0]  (!%p1351_p13), %s161_s12, 4096, %s163_s19, %s151_s21, %s1263_s4, %s1263_s4, %s1264_s5  }
  0x24   : > { %174 = sbr.rel (%p1334_p9) target bundleno = 370 (0x172), region = 32  ;;  %s176_s6 = sand.u32 (!%p1334_p9), 1, %s1247_s13  }
  0x25   : > { %s1373_s7 = sshll.u32 (!%p1334_p9), %s176_s6, 8  ;;  %s177_s8 = scalar_lea.sflag (!%p1334_p9), [#allocation3], %s176_s6 }
  0x26   : > { %s180_s9 = scalar_lea.vmem (!%p1334_p9), [#allocation2], %s1373_s7 }
  0x29   : > { %1230 = dma.done.wait (%p1330_p8), %s177_s8, 4096  }
  0x2a   : > { %1232 = vsyncadd (%p1330_p8), %s177_s8, 4294963200 }
  0x2b   : > { %1234 = dma.done.wait (%p39_p5), [#allocation4], 16  }
  0x2c   : > { %1236 = vsyncadd (%p39_p5), [#allocation4], 4294967280 }
  0x2d   : > { %1238 = dma.done.wait (%p39_p5), [#allocation7], 16  }
  0x2e   : > { %1240 = vsyncadd (%p39_p5), [#allocation7], 4294967280 }
  0x2f   : > { %196 = sfence }
  0x30   : > { %p215_p9 = scmp.lt.s32.totalorder %s1306_s16, 1  ;;  %s1395_s11 = smov 0  }
  0x32   : > { %s1774_s16 = smov (!%p215_p9, %s1306_s16), 1 }
  0x33   : > { %s1076_s23 = smul.u32 448, %s1774_s16 }
  0x35   : > { %s1393_s10 = scalar_lea.vmem %s1764_s3, %s1076_s23 }
  0x36 LB: >> { %s1004_s12 = sld [smem:[#allocation5 + $0x1c]]  ;;  %s1001_s18 = sshll.u32 %s1259_s11, 4  ;;  %vm867_vm0 = vcmask 113664   ;;  %vm869_vm1 = vcmask 111616   ;;  %s1259_s11 = sphi %s1395_s11, %s225_s11  }
  0x37   : >> { %s1003_s19 = sld [smem:[#allocation5 + $0x1]]  ;;  %s1405_s16 = scalar_lea.vmem %s180_s9, %s1001_s18 [#allocation2] }
  0x38   : >> { %s1005_s21 = sld [smem:[#allocation5 + $0x2]]  ;;  %v1408_v0 = vld [vmem:[%s1405_s16] sm:$0xff]  ;;  %s1265_s24 = smov 127   ;;  %v1415_v7 = vld [vmem:[%s1405_s16 + $0x8] sm:$0x3f]  ;;  %v1476_v44 = vld [vmem:[%s1405_s16 + $0x10] sm:$0xff] }
  0x39   : >> { %s1006_s25 = sld [smem:[#allocation5 + $0x1d]]  ;;  %s1266_s26 = smov 126   ;;  %v1428_v14 = vld [vmem:[%s1405_s16 + $0x1] sm:$0xff]  ;;  %v1434_v18 = vld [vmem:[%s1405_s16 + $0x9] sm:$0x3f]  ;;  %v1494_v56 = vld [vmem:[%s1405_s16 + $0x11] sm:$0xff] }
  0x3a   : >> { %s1009_s15 = sld [smem:[#allocation5 + $0x4]]  ;;  %v1449_v27 = vld [vmem:[%s1405_s16 + $0x2] sm:$0xff]  ;;  %v1455_v31 = vld [vmem:[%s1405_s16 + $0xa] sm:$0x3f]  ;;  %v1473_v42 = vld [vmem:[%s1405_s16 + $0x18] sm:$0x3f] }
  0x3b   : >> { %s1010_s27 = sld [smem:[#allocation5 + $0x1f]]  ;;  %v1500_v60 = vld [vmem:[%s1405_s16 + $0x19] sm:$0x3f]  ;;  %s225_s11 = sadd.s32 1, %s1259_s11  }
  0x3c   : >> { %v253_v1 = vstv %s1004_s12  ;;  %s1011_s28 = sld [smem:[#allocation5 + $0x5]]  ;;  %p222_p5 = scmp.ge.s32.totalorder %s225_s11, 14  }
  0x3d   : >> { %v254_v2 = vmul.f32 %v253_v1, %v1408_v0  ;;  %v239_v3 = vstv %s1003_s19  ;;  %v255_v8 = vmul.f32 %v253_v1, %v1415_v7  ;;  %s1012_s29 = sld [smem:[#allocation5 + $0x20]] }
  0x3e   : >> { %v240_v4 = vmul.f32 %v239_v3, %v1408_v0  ;;  %v267_v5 = vstv %s1005_s21  ;;  %v241_v9 = vmul.f32 %v239_v3, %v1415_v7  ;;  %s1015_s4 = sld [smem:[#allocation5 + $0x7]] }
  0x3f   : >> { %258 = vrot.lane.b32.xlu1 %v254_v2, %s1265_s24  ;;  %v268_v6 = vmul.f32 %v267_v5, %v1408_v0  ;;  %v269_v10 = vmul.f32 %v267_v5, %v1415_v7  ;;  %v281_v11 = vstv %s1006_s25  ;;  %s1016_s5 = sld [smem:[#allocation5 + $0x22]] }
  0x40   : >> { %244 = vrot.lane.b32.xlu0 %v240_v4, %s1265_s24  ;;  %v283_v12 = vmul.f32 %v281_v11, %v1415_v7  ;;  %v282_v13 = vmul.f32 %v281_v11, %v1408_v0  ;;  %v309_v15 = vstv %s1009_s15  ;;  %s1017_s6 = sld [smem:[#allocation5 + $0x8]] }
  0x41   : >> { %272 = vrot.lane.b32.xlu2 %v268_v6, %s1266_s26  ;;  %v310_v16 = vmul.f32 %v309_v15, %v1428_v14  ;;  %v323_v17 = vstv %s1010_s27  ;;  %v311_v20 = vmul.f32 %v309_v15, %v1434_v18  ;;  %s1018_s8 = sld [smem:[#allocation5 + $0x23]] }
  0x42   : >> { %v324_v19 = vmul.f32 %v323_v17, %v1428_v14  ;;  %v325_v21 = vmul.f32 %v323_v17, %v1434_v18  ;;  %v337_v22 = vstv %s1011_s28  ;;  %s1024_s23 = sld [smem:[#allocation5 + $0xa]] }
  0x43   : >> { %v339_v23 = vmul.f32 %v337_v22, %v1434_v18  ;;  %v338_v24 = vmul.f32 %v337_v22, %v1428_v14  ;;  %v351_v25 = vstv %s1012_s29  ;;  %s1025_s22 = sld [smem:[#allocation5 + $0x25]] }
  0x44   : >> { %v352_v26 = vmul.f32 %v351_v25, %v1428_v14  ;;  %v379_v28 = vstv %s1015_s4  ;;  %v353_v30 = vmul.f32 %v351_v25, %v1434_v18  ;;  %s1026_s30 = sld [smem:[#allocation5 + $0xb]] }
  0x45   : >> { %v380_v29 = vmul.f32 %v379_v28, %v1449_v27  ;;  %v381_v32 = vmul.f32 %v379_v28, %v1455_v31  ;;  %v393_v33 = vstv %s1016_s5  ;;  %s1027_s12 = sld [smem:[#allocation5 + $0x26]] }
  0x46   : >> { %v395_v34 = vmul.f32 %v393_v33, %v1455_v31  ;;  %v394_v35 = vmul.f32 %v393_v33, %v1449_v27  ;;  %v407_v36 = vstv %s1017_s6  ;;  %s1032_s19 = sld [smem:[#allocation5 + $0xd]] }
  0x47   : >> { %260 = vrot.lane.b32.xlu1 %v255_v8, %s1265_s24  ;;  %v408_v37 = vmul.f32 %v407_v36, %v1449_v27  ;;  %v421_v38 = vstv %s1018_s8  ;;  %v409_v40 = vmul.f32 %v407_v36, %v1455_v31  ;;  %s1033_s21 = sld [smem:[#allocation5 + $0x28]]  ;;  %v1515_v8 = vld [vmem:[%s1405_s16 + $0x12] sm:$0xff] }
  0x48   : >> { %246 = vrot.lane.b32.xlu0 %v241_v9, %s1265_s24  ;;  %v422_v39 = vmul.f32 %v421_v38, %v1449_v27  ;;  %v423_v41 = vmul.f32 %v421_v38, %v1455_v31  ;;  %v452_v43 = vstv %s1024_s23  ;;  %s1034_s25 = sld [smem:[#allocation5 + $0xe]] }
  0x49   : >> { %274 = vrot.lane.b32.xlu2 %v269_v10, %s1266_s26  ;;  %v454_v45 = vmul.f32 %v1473_v42, %v452_v43  ;;  %v453_v46 = vmul.f32 %v1476_v44, %v452_v43  ;;  %v466_v47 = vstv %s1025_s22  ;;  %s1035_s15 = sld [smem:[#allocation5 + $0x29]] }
  0x4a   : >> { %v467_v48 = vmul.f32 %v1476_v44, %v466_v47  ;;  %v480_v49 = vstv %s1026_s30  ;;  %v468_v51 = vmul.f32 %v1473_v42, %v466_v47  ;;  %s1040_s27 = sld [smem:[#allocation5 + $0x10]] }
  0x4b   : >> { %v481_v50 = vmul.f32 %v1476_v44, %v480_v49  ;;  %v482_v52 = vmul.f32 %v1473_v42, %v480_v49  ;;  %v494_v53 = vstv %s1027_s12  ;;  %s1041_s28 = sld [smem:[#allocation5 + $0x2b]] }
  0x4c   : >> { %v496_v54 = vmul.f32 %v1473_v42, %v494_v53  ;;  %v495_v55 = vmul.f32 %v1476_v44, %v494_v53  ;;  %v522_v57 = vstv %s1032_s19  ;;  %s1519_s29 = sld [smem:[#allocation5]] }
  0x4d   : >> { %v523_v58 = vmul.f32 %v1494_v56, %v522_v57  ;;  %v536_v59 = vstv %s1033_s21  ;;  %v524_v62 = vmul.f32 %v1500_v60, %v522_v57  ;;  %s1042_s4 = sld [smem:[#allocation5 + $0x11]] }
  0x4e   : >> { %v537_v61 = vmul.f32 %v1494_v56, %v536_v59  ;;  %v538_v63 = vmul.f32 %v1500_v60, %v536_v59  ;;  %v550_v1 = vstv %s1034_s25  ;;  %s1527_s5 = sld [smem:[#allocation5 + $0x3]] }
  0x4f   : >> { %288 = vrot.lane.b32.xlu1 %v283_v12, %s1266_s26  ;;  %v552_v2 = vmul.f32 %v1500_v60, %v550_v1  ;;  %v551_v4 = vmul.f32 %v1494_v56, %v550_v1  ;;  %v564_v5 = vstv %s1035_s15  ;;  %s1043_s6 = sld [smem:[#allocation5 + $0x2c]] }
  0x50   : >> { %286 = vrot.lane.b32.xlu0 %v282_v13, %s1266_s26  ;;  %v565_v6 = vmul.f32 %v1494_v56, %v564_v5  ;;  %v592_v9 = vstv %s1040_s27  ;;  %v566_v12 = vmul.f32 %v1500_v60, %v564_v5  ;;  %v1523_v13 = vld [vmem:[%s1405_s16 + $0x1a] sm:$0x3f]  ;;  %s1539_s8 = sld [smem:[#allocation5 + $0x13]] }
  0x51   : >> { %314 = vrot.lane.b32.xlu2 %v310_v16, %s1265_s24  ;;  %v593_v10 = vmul.f32 %v1515_v8, %v592_v9  ;;  %v594_v15 = vmul.f32 %v1523_v13, %v592_v9  ;;  %v606_v16 = vstv %s1041_s28  ;;  %s1542_s23 = sld [smem:[#allocation5 + $0x1b]] }
  0x52   : >> { %v608_v17 = vmul.f32 %v1523_v13, %v606_v16  ;;  %s1547_s22 = sld [smem:[#allocation5 + $0x2e]] }
  0x53   : >> { %v620_v22 = vstv %s1042_s4  ;;  %s1549_s30 = sld [smem:[#allocation5 + $0x1e]] }
  0x54   : >> { %v297_v25 = vstv %s1527_s5  ;;  %s1559_s12 = sld [smem:[#allocation5 + $0x14]] }
  0x55   : >> { %s1579_s19 = sld [smem:[#allocation5 + $0x2f]] }
  0x56   : >> { %s1585_s21 = sld [smem:[#allocation5 + $0x16]] }
  0x57   : >> { %328 = vrot.lane.b32.xlu1 %v324_v19, %s1265_s24  ;;  %v235_v47 = vstv %s1542_s23  ;;  %s1588_s25 = sld [smem:[#allocation5 + $0x6]] }
  0x58   : >> { %316 = vrot.lane.b32.xlu0 %v311_v20, %s1265_s24  ;;  %v607_v20 = vmul.f32 %v1515_v8, %v606_v16  ;;  %s1594_s15 = sld [smem:[#allocation5 + $0x31]] }
  0x59   : >> { %330 = vrot.lane.b32.xlu2 %v325_v21, %s1265_s24  ;;  %v231_v21 = vstv %s1519_s29  ;;  %s1059_s27 = sld [smem:[#allocation5 + $0x17]] }
  0x5a   : >> { %s1014_s28 = sld [smem:[#allocation5 + $0x21]] }
  0x5b   : >> { %s1617_s29 = sld [smem:[#allocation5 + $0x32]] }
  0x5c   : >> { %s1622_s4 = sld [smem:[#allocation5 + $0x19]] }
  0x5d   : >> { %s1632_s5 = sld [smem:[#allocation5 + $0x24]] }
  0x5e   : >> { %s1645_s23 = sld [smem:[#allocation5 + $0x1a]] }
  0x5f   : >> { %344 = vrot.lane.b32.xlu1 %v339_v23, %s1266_s26  ;;  %v621_v23 = vmul.f32 %v1515_v8, %v620_v22 }
  0x60   : >> { %342 = vrot.lane.b32.xlu0 %v338_v24, %s1266_s26  ;;  %v232_v24 = vmul.f32 %v231_v21, %v1408_v0 }
  0x61   : >> { %356 = vrot.lane.b32.xlu2 %v352_v26, %s1266_s26  ;;  %v634_v26 = vstv %s1043_s6  ;;  %s1066_s6 = sld [smem:[#allocation5 + $0x34]] }
  0x62   : >> { %v635_v33 = vmul.f32 %v1515_v8, %v634_v26 }
  0x67   : >> { %384 = vrot.lane.b32.xlu1 %v380_v29, %s1265_s24 }
  0x68   : >> { %358 = vrot.lane.b32.xlu0 %v353_v30, %s1266_s26 }
  0x69   : >> { %386 = vrot.lane.b32.xlu2 %v381_v32, %s1265_s24  ;;  %v298_v32 = vmul.f32 %v297_v25, %v1428_v14 }
  0x6f   : >> { %400 = vrot.lane.b32.xlu1 %v395_v34, %s1265_s24 }
  0x70   : >> { %398 = vrot.lane.b32.xlu0 %v394_v35, %s1265_s24  ;;  %v622_v35 = vmul.f32 %v1523_v13, %v620_v22 }
  0x71   : >> { %412 = vrot.lane.b32.xlu2 %v408_v37, %s1266_s26  ;;  %v636_v37 = vmul.f32 %v1523_v13, %v634_v26  ;;  %v1600_v26 = vld [vmem:[%s1405_s16 + $0x21] sm:$0xff] }
  0x77   : >> { %426 = vrot.lane.b32.xlu1 %v422_v39, %s1266_s26  ;;  %v233_v39 = vmul.f32 %v231_v21, %v1415_v7 }
  0x78   : >> { %414 = vrot.lane.b32.xlu0 %v409_v40, %s1266_s26  ;;  %v1556_v40 = vld [vmem:[%s1405_s16 + $0x28] sm:$0x3f] }
  0x79   : >> { %428 = vrot.lane.b32.xlu2 %v423_v41, %s1266_s26  ;;  %v665_v41 = vstv %s1539_s8  ;;  %s1022_s8 = sld [smem:[#allocation5 + $0x9]] }
  0x7f   : >> { %459 = vrot.lane.b32.xlu1 %v454_v45, %s1265_s24 }
  0x80   : >> { %457 = vrot.lane.b32.xlu0 %v453_v46, %s1265_s24  ;;  %v1564_v46 = vld [vmem:[%s1405_s16 + $0x20] sm:$0xff] }
  0x81   : >> { %471 = vrot.lane.b32.xlu2 %v467_v48, %s1265_s24  ;;  %v666_v53 = vmul.f32 %v1564_v46, %v665_v41 }
  0x87   : >> { %485 = vrot.lane.b32.xlu1 %v481_v50, %s1266_s26  ;;  %v667_v50 = vmul.f32 %v1556_v40, %v665_v41 }
  0x88   : >> { %473 = vrot.lane.b32.xlu0 %v468_v51, %s1265_s24 }
  0x89   : >> { %487 = vrot.lane.b32.xlu2 %v482_v52, %s1266_s26  ;;  %v237_v52 = vmul.f32 %v235_v47, %v1415_v7 }
  0x8f   : >> { %501 = vrot.lane.b32.xlu1 %v496_v54, %s1266_s26  ;;  %v679_v54 = vstv %s1547_s22  ;;  %s1652_s22 = sld [smem:[#allocation5 + $0x35]] }
  0x90   : >> { %499 = vrot.lane.b32.xlu0 %v495_v55, %s1266_s26  ;;  %v236_v55 = vmul.f32 %v235_v47, %v1408_v0  ;;  %v680_v59 = vmul.f32 %v1564_v46, %v679_v54  ;;  %v681_v9 = vmul.f32 %v1556_v40, %v679_v54 }
  0x91   : >> { %527 = vrot.lane.b32.xlu2 %v523_v58, %s1265_s24  ;;  %v303_v58 = vstv %s1549_s30  ;;  %s1031_s30 = sld [smem:[#allocation5 + $0x27]] }
  0x97   : >> { %541 = vrot.lane.b32.xlu1 %v537_v61, %s1265_s24 }
  0x98   : >> { %529 = vrot.lane.b32.xlu0 %v524_v62, %s1265_s24  ;;  %v305_v62 = vmul.f32 %v303_v58, %v1434_v18 }
  0x99   : >> { %543 = vrot.lane.b32.xlu2 %v538_v63, %s1265_s24  ;;  %v693_v63 = vstv %s1559_s12  ;;  %s1687_s12 = sld [smem:[#allocation5 + $0x12]] }
  0x9b   : >> { %v273_v3 = vpop.permute.xlu2 %272 }
  0x9f   : >> { %557 = vrot.lane.b32.xlu1 %v552_v2, %s1266_s26 }
  0xa0   : >> { %555 = vrot.lane.b32.xlu0 %v551_v4, %s1266_s26  ;;  %v694_v4 = vmul.f32 %v1564_v46, %v693_v63 }
  0xa1   : >> { %569 = vrot.lane.b32.xlu2 %v565_v6, %s1266_s26 }
  0xa3   : >> { %v275_v11 = vpop.permute.xlu2 %274 }
  0xa7   : >> { %597 = vrot.lane.b32.xlu1 %v593_v10, %s1265_s24  ;;  %v304_v10 = vmul.f32 %v303_v58, %v1428_v14 }
  0xa8   : >> { %571 = vrot.lane.b32.xlu0 %v566_v12, %s1266_s26  ;;  %v695_v12 = vmul.f32 %v1556_v40, %v693_v63 }
  0xa9   : >> { %599 = vrot.lane.b32.xlu2 %v594_v15, %s1265_s24 }
  0xab   : >> { %v315_v19 = vpop.permute.xlu2 %314 }
  0xaf   : >> { %613 = vrot.lane.b32.xlu1 %v608_v17, %s1265_s24  ;;  %v707_v17 = vstv %s1579_s19  ;;  %s1048_s19 = sld [smem:[#allocation5 + $0x2d]] }
  0xb0   : >> { %611 = vrot.lane.b32.xlu0 %v607_v20, %s1265_s24  ;;  %v709_v22 = vmul.f32 %v1556_v40, %v707_v17 }
  0xb1   : >> { %v259_v28 = vpop.permute.xlu1 %258  ;;  %625 = vrot.lane.b32.xlu2 %v621_v23, %s1266_s26 }
  0xb2   : >> { %v245_v29 = vpop.permute.xlu0 %244  ;;  %v264_v7 = vadd.f32 %v259_v28, %v236_v55  ;;  %v735_v28 = vstv %s1585_s21  ;;  %v373_v55 = vstv %s1014_s28  ;;  %s1694_s21 = sld [smem:[#allocation5 + $0x15]] }
  0xb3   : >> { %v250_v30 = vadd.f32 %v245_v29, %v232_v24  ;;  %v331_v34 = vpop.permute.xlu2 %330  ;;  %v367_v29 = vstv %s1588_s25  ;;  %v375_v63 = vmul.f32 %v373_v55, %v1455_v31  ;;  %s1700_s25 = sld [smem:[#allocation5 + $0x30]] }
  0xb4   : >> { %s1716_s28 = sld [smem:[#allocation6]] }
  0xb5   : >> { %v278_v36 = vadd.f32 %v273_v3, %v250_v30  ;;  %v736_v30 = vmul.f32 %v1600_v26, %v735_v28 }
  0xb7   : >> { %v300_v38 = vadd.f32 %v298_v32, %v278_v36  ;;  %639 = vrot.lane.b32.xlu1 %v635_v33, %s1266_s26  ;;  %v369_v32 = vmul.f32 %v367_v29, %v1455_v31  ;;  %v749_v33 = vstv %s1594_s15  ;;  %s1704_s15 = sld [smem:[#allocation5 + $0x18]] }
  0xb8   : >> { %627 = vrot.lane.b32.xlu0 %v622_v35, %s1266_s26  ;;  %v1610_v35 = vld [vmem:[%s1405_s16 + $0x29] sm:$0x3f] }
  0xb9   : >> { %v1561_v43 = vadd.f32 %v315_v19, %v300_v38  ;;  %v261_v45 = vpop.permute.xlu1 %260  ;;  %641 = vrot.lane.b32.xlu2 %v636_v37, %s1266_s26  ;;  %v737_v47 = vmul.f32 %v1610_v35, %v735_v28 }
  0xba   : >> { %v247_v48 = vpop.permute.xlu0 %246  ;;  %v265_v61 = vadd.f32 %v261_v45, %v237_v52 }
  0xbb   : >> { %v251_v49 = vadd.f32 %v247_v48, %v233_v39  ;;  %v357_v51 = vpop.permute.xlu2 %356  ;;  %v750_v39 = vmul.f32 %v1600_v26, %v749_v33  ;;  %v368_v48 = vmul.f32 %v367_v29, %v1449_v27 }
  0xbd   : >> { %v279_v57 = vadd.f32 %v275_v11, %v251_v49  ;;  %v299_v11 = vmul.f32 %v297_v25, %v1434_v18  ;;  %v708_v25 = vmul.f32 %v1564_v46, %v707_v17  ;;  %v751_v49 = vmul.f32 %v1610_v35, %v749_v33 }
  0xbe   : >> { %v833_v33 = vstv %s1645_s23 }
  0xbf   : >> { %672 = vrot.lane.b32.xlu1 %v667_v50, %s1265_s24  ;;  %v301_v19 = vadd.f32 %v299_v11, %v279_v57 }
  0xc0   : >> { %670 = vrot.lane.b32.xlu0 %v666_v53, %s1265_s24 }
  0xc1   : >> { %v289_v1 = vpop.permute.xlu1 %288  ;;  %684 = vrot.lane.b32.xlu2 %v680_v59, %s1265_s24 }
  0xc2   : >> { %v293_v2 = vadd.f32 %v289_v1, %v265_v61  ;;  %v287_v0 = vpop.permute.xlu0 %286  ;;  %v374_v1 = vmul.f32 %v373_v55, %v1449_v27 }
  0xc3   : >> { %v292_v3 = vadd.f32 %v287_v0, %v264_v7  ;;  %v387_v5 = vpop.permute.xlu2 %386  ;;  %v777_v7 = vstv %s1617_s29  ;;  %s1726_s29 = sld [smem:[#allocation6 + $0x1]] }
  0xc4   : >> { %v307_v6 = vadd.f32 %v305_v62, %v293_v2  ;;  %v778_v2 = vmul.f32 %v1600_v26, %v777_v7 }
  0xc5   : >> { %v306_v16 = vadd.f32 %v304_v10, %v292_v3  ;;  %v1636_v3 = vld [vmem:[%s1405_s16 + $0x22] sm:$0xff] }
  0xc6   : >> { %v335_v15 = vadd.f32 %v331_v34, %v307_v6 }
  0xc7   : >> { %698 = vrot.lane.b32.xlu1 %v694_v4, %s1266_s26  ;;  %v805_v4 = vstv %s1622_s4  ;;  %s1732_s4 = scalar_lea.vmem %s1393_s10, %s1001_s18 }
  0xc8   : >> { %686 = vrot.lane.b32.xlu0 %v681_v9, %s1265_s24  ;;  %v806_v10 = vmul.f32 %v1636_v3, %v805_v4 }
  0xc9   : >> { %v329_v14 = vpop.permute.xlu1 %328  ;;  %700 = vrot.lane.b32.xlu2 %v695_v12, %s1266_s26 }
  0xca   : >> { %v334_v18 = vadd.f32 %v329_v14, %v306_v16  ;;  %v317_v20 = vpop.permute.xlu0 %316  ;;  %v1643_v16 = vld [vmem:[%s1405_s16 + $0x2a] sm:$0x3f]  ;;  %v446_v14 = vstv %s1632_s5  ;;  %s1662_s16 = sld [smem:[#allocation5 + $0xc]] }
  0xcb   : >> { %v321_v21 = vadd.f32 %v317_v20, %v301_v19  ;;  %v413_v23 = vpop.permute.xlu2 %412  ;;  %v807_v17 = vmul.f32 %v1643_v16, %v805_v4  ;;  %v447_v19 = vmul.f32 %v1476_v44, %v446_v14 }
  0xcc   : >> { %v362_v24 = vadd.f32 %v357_v51, %v334_v18  ;;  %v819_v18 = vstv %s1066_s6 }
  0xce   : >> { %v376_v31 = vadd.f32 %v374_v1, %v362_v24 }
  0xcf   : >> { %714 = vrot.lane.b32.xlu1 %v709_v22, %s1266_s26 }
  0xd0   : >> { %712 = vrot.lane.b32.xlu0 %v708_v25, %s1266_s26  ;;  %v821_v25 = vmul.f32 %v1643_v16, %v819_v18 }
  0xd1   : >> { %v345_v34 = vpop.permute.xlu1 %344  ;;  %740 = vrot.lane.b32.xlu2 %v736_v30, %s1265_s24  ;;  %v820_v30 = vmul.f32 %v1636_v3, %v819_v18 }
  0xd2   : >> { %v349_v36 = vadd.f32 %v345_v34, %v321_v21  ;;  %v343_v37 = vpop.permute.xlu0 %342 }
  0xd3   : >> { %v348_v38 = vadd.f32 %v343_v37, %v1561_v43  ;;  %v429_v41 = vpop.permute.xlu2 %428  ;;  %v763_v43 = vstv %s1059_s27  ;;  %s1714_s27 = sld [smem:[#allocation5 + $0x33]] }
  0xd4   : >> { %v371_v45 = vadd.f32 %v369_v32, %v349_v36  ;;  %v765_v58 = vmul.f32 %v1610_v35, %v763_v43  ;;  %v764_v62 = vmul.f32 %v1600_v26, %v763_v43  ;;  %v834_v36 = vmul.f32 %v1636_v3, %v833_v33 }
  0xd5   : >> { %v370_v51 = vadd.f32 %v368_v48, %v348_v38  ;;  %v835_v43 = vmul.f32 %v1643_v16, %v833_v33 }
  0xd6   : >> { %v391_v50 = vadd.f32 %v387_v5, %v371_v45 }
  0xd7   : >> { %754 = vrot.lane.b32.xlu1 %v750_v39, %s1265_s24  ;;  %v847_v39 = vstv %s1652_s22 }
  0xd8   : >> { %742 = vrot.lane.b32.xlu0 %v737_v47, %s1265_s24 }
  0xd9   : >> { %v385_v52 = vpop.permute.xlu1 %384  ;;  %756 = vrot.lane.b32.xlu2 %v751_v49, %s1265_s24 }
  0xda   : >> { %v390_v53 = vadd.f32 %v385_v52, %v370_v51  ;;  %v359_v54 = vpop.permute.xlu0 %358  ;;  %v448_v52 = vmul.f32 %v1473_v42, %v446_v14 }
  0xdb   : >> { %v363_v57 = vadd.f32 %v359_v54, %v335_v15  ;;  %v472_v59 = vpop.permute.xlu2 %471  ;;  %v779_v15 = vmul.f32 %v1610_v35, %v777_v7  ;;  %v510_v54 = vstv %s1662_s16 }
  0xdc   : >> { %v418_v61 = vadd.f32 %v413_v23, %v390_v53  ;;  %v440_v23 = vstv %s1022_s8  ;;  %v849_v53 = vmul.f32 %v1643_v16, %v847_v39  ;;  %v511_v55 = vmul.f32 %v1494_v56, %v510_v54 }
  0xdd   : >> { %v377_v0 = vadd.f32 %v375_v63, %v363_v57  ;;  %v442_v32 = vmul.f32 %v1473_v42, %v440_v23  ;;  %v441_v34 = vmul.f32 %v1476_v44, %v440_v23  ;;  %v848_v44 = vmul.f32 %v1636_v3, %v847_v39 }
  0xde   : >> { %v516_v42 = vstv %s1031_s30 }
  0xdf   : >> { %770 = vrot.lane.b32.xlu1 %v765_v58, %s1266_s26  ;;  %v443_v45 = vadd.f32 %v441_v34, %v418_v61 }
  0xe0   : >> { %768 = vrot.lane.b32.xlu0 %v764_v62, %s1266_s26 }
  0xe1   : >> { %v401_v5 = vpop.permute.xlu1 %400  ;;  %782 = vrot.lane.b32.xlu2 %v778_v2, %s1266_s26  ;;  %v518_v2 = vmul.f32 %v1500_v60, %v516_v42 }
  0xe2   : >> { %v405_v27 = vadd.f32 %v401_v5, %v377_v0  ;;  %v399_v6 = vpop.permute.xlu0 %398 }
  0xe3   : >> { %v404_v9 = vadd.f32 %v399_v6, %v376_v31  ;;  %v488_v11 = vpop.permute.xlu2 %487 }
  0xe4   : >> { %v433_v12 = vadd.f32 %v429_v41, %v405_v27 }
  0xe6   : >> { %v450_v58 = vadd.f32 %v448_v52, %v433_v12 }
  0xe7   : >> { %810 = vrot.lane.b32.xlu1 %v806_v10, %s1265_s24  ;;  %v512_v10 = vmul.f32 %v1500_v60, %v510_v54  ;;  %v653_v54 = vstv %s1687_s12 }
  0xe8   : >> { %784 = vrot.lane.b32.xlu0 %v779_v15, %s1266_s26 }
  0xe9   : >> { %v427_v20 = vpop.permute.xlu1 %426  ;;  %812 = vrot.lane.b32.xlu2 %v807_v17, %s1265_s24 }
  0xea   : >> { %v432_v21 = vadd.f32 %v427_v20, %v404_v9  ;;  %v415_v22 = vpop.permute.xlu0 %414  ;;  %v517_v9 = vmul.f32 %v1494_v56, %v516_v42 }
  0xeb   : >> { %v419_v24 = vadd.f32 %v415_v22, %v391_v50  ;;  %v528_v28 = vpop.permute.xlu2 %527 }
  0xec   : >> { %v449_v29 = vadd.f32 %v447_v19, %v432_v21 }
  0xed   : >> { %v444_v38 = vadd.f32 %v442_v32, %v419_v24 }
  0xee   : >> { %v477_v37 = vadd.f32 %v472_v59, %v449_v29 }
  0xef   : >> { %826 = vrot.lane.b32.xlu1 %v821_v25, %s1265_s24 }
  0xf0   : >> { %824 = vrot.lane.b32.xlu0 %v820_v30, %s1265_s24  ;;  %s1679_s24 = sld [smem:[#allocation5 + $0xf]] }
  0xf1   : >> { %v460_v41 = vpop.permute.xlu1 %459  ;;  %838 = vrot.lane.b32.xlu2 %v834_v36, %s1266_s26 }
  0xf2   : >> { %v464_v47 = vadd.f32 %v460_v41, %v444_v38  ;;  %v458_v48 = vpop.permute.xlu0 %457 }
  0xf3   : >> { %v463_v49 = vadd.f32 %v458_v48, %v443_v45  ;;  %v544_v50 = vpop.permute.xlu2 %543 }
  0xf4   : >> { %v492_v51 = vadd.f32 %v488_v11, %v464_v47 }
  0xf6   : >> { %v514_v17 = vadd.f32 %v512_v10, %v492_v51  ;;  %v580_v22 = vstv %s1679_s24 }
  0xf7   : >> { %852 = vrot.lane.b32.xlu1 %v848_v44, %s1266_s26  ;;  %v582_v23 = vmul.f32 %v1523_v13, %v580_v22 }
  0xf8   : >> { %840 = vrot.lane.b32.xlu0 %v835_v43, %s1266_s26 }
  0xf9   : >> { %v486_v57 = vpop.permute.xlu1 %485  ;;  %854 = vrot.lane.b32.xlu2 %v849_v53, %s1266_s26  ;;  %s1039_s26 = sld [smem:[#allocation5 + $0x2a]] }
  0xfa   : >> { %v491_v59 = vadd.f32 %v486_v57, %v463_v49  ;;  %v474_v61 = vpop.permute.xlu0 %473  ;;  %v581_v49 = vmul.f32 %v1515_v8, %v580_v22  ;;  %v729_v22 = vstv %s1700_s25 }
  0xfb   : >> { %v478_v62 = vadd.f32 %v474_v61, %v450_v58  ;;  %v570_v63 = vpop.permute.xlu2 %569  ;;  %v654_v61 = vmul.f32 %v1564_v46, %v653_v54 }
  0xfc   : >> { %v513_v7 = vadd.f32 %v511_v55, %v491_v59 }
  0xfe   : >> { %v533_v1 = vadd.f32 %v528_v28, %v513_v7 }
  0xff   : >> { %v586_v53 = vstv %s1039_s26 }
 0x100   : >> { %v588_v57 = vmul.f32 %v1523_v13, %v586_v53 }
 0x101   : >> { %v502_v0 = vpop.permute.xlu1 %501 }
 0x102   : >> { %v506_v4 = vadd.f32 %v502_v0, %v478_v62  ;;  %v500_v5 = vpop.permute.xlu0 %499 }
 0x103   : >> { %v505_v31 = vadd.f32 %v500_v5, %v477_v37  ;;  %v600_v27 = vpop.permute.xlu2 %599  ;;  %v723_v5 = vstv %s1694_s21 }
 0x104   : >> { %v520_v6 = vadd.f32 %v518_v2, %v506_v4  ;;  %v659_v2 = vstv %s1048_s19  ;;  %v724_v10 = vmul.f32 %v1600_v26, %v723_v5 }
 0x105   : >> { %v519_v12 = vadd.f32 %v517_v9, %v505_v31  ;;  %v661_v13 = vmul.f32 %v1556_v40, %v659_v2 }
 0x106   : >> { %v548_v11 = vadd.f32 %v544_v50, %v520_v6 }
 0x109   : >> { %v542_v15 = vpop.permute.xlu1 %541 }
 0x10a   : >> { %v547_v14 = vadd.f32 %v542_v15, %v519_v12  ;;  %v530_v19 = vpop.permute.xlu0 %529 }
 0x10b   : >> { %v534_v18 = vadd.f32 %v530_v19, %v514_v17  ;;  %v626_v20 = vpop.permute.xlu2 %625  ;;  %v660_v17 = vmul.f32 %v1564_v46, %v659_v2 }
 0x10c   : >> { %v575_v21 = vadd.f32 %v570_v63, %v547_v14 }
 0x111   : >> { %v558_v24 = vpop.permute.xlu1 %557 }
 0x112   : >> { %v562_v25 = vadd.f32 %v558_v24, %v534_v18  ;;  %v556_v56 = vpop.permute.xlu0 %555  ;;  %v793_v24 = vstv %s1704_s15 }
 0x113   : >> { %v642_v28 = vpop.permute.xlu2 %641  ;;  %v561_v48 = vadd.f32 %v556_v56, %v533_v1  ;;  %v587_v1 = vmul.f32 %v1515_v8, %v586_v53  ;;  %v799_v53 = vstv %s1714_s27 }
 0x114   : >> { %v584_v60 = vadd.f32 %v582_v23, %v562_v25 }
 0x115   : >> { %v583_v43 = vadd.f32 %v581_v49, %v561_v48  ;;  %v725_v49 = vmul.f32 %v1610_v35, %v723_v5 }
 0x116   : >> { %v604_v29 = vadd.f32 %v600_v27, %v584_v60  ;;  %v589_v27 = vadd.f32 %v587_v1, %v575_v21  ;;  %v731_v60 = vmul.f32 %v1610_v35, %v729_v22 }
 0x119   : >> { %v598_v30 = vpop.permute.xlu1 %597 }
 0x11a   : >> { %v572_v32 = vpop.permute.xlu0 %571  ;;  %v603_v52 = vadd.f32 %v598_v30, %v583_v43 }
 0x11b   : >> { %v1683_v33 = vpop.permute.xlu2 %684  ;;  %v576_v55 = vadd.f32 %v572_v32, %v548_v11 }
 0x11c   : >> { %v631_v59 = vadd.f32 %v626_v20, %v603_v52  ;;  %v655_v20 = vmul.f32 %v1556_v40, %v653_v54  ;;  %v794_v40 = vmul.f32 %v1636_v3, %v793_v24 }
 0x11d   : >> { %v590_v7 = vadd.f32 %v588_v57, %v576_v55 }
 0x11e   : >> { %v656_v0 = vadd.f32 %v654_v61, %v631_v59 }
 0x121   : >> { %v614_v34 = vpop.permute.xlu1 %613 }
 0x122   : >> { %v612_v36 = vpop.permute.xlu0 %611  ;;  %v618_v42 = vadd.f32 %v614_v34, %v590_v7 }
 0x123   : >> { %v1685_v37 = vpop.permute.xlu2 %700  ;;  %v617_v8 = vadd.f32 %v612_v36, %v589_v27 }
 0x124   : >> { %v646_v6 = vadd.f32 %v642_v28, %v618_v42 }
 0x126   : >> { %v663_v14 = vadd.f32 %v661_v13, %v646_v6  ;;  %v872_v13 = vstv %s1726_s29 }
 0x129   : >> { %v640_v38 = vpop.permute.xlu1 %639 }
 0x12a   : >> { %v628_v39 = vpop.permute.xlu0 %627  ;;  %v645_v15 = vadd.f32 %v640_v38, %v617_v8 }
 0x12b   : >> { %v741_v41 = vpop.permute.xlu2 %740  ;;  %v632_v18 = vadd.f32 %v628_v39, %v604_v29 }
 0x12c   : >> { %v662_v25 = vadd.f32 %v660_v17, %v645_v15 }
 0x12d   : >> { %v657_v32 = vadd.f32 %v655_v20, %v632_v18 }
 0x12e   : >> { %v690_v34 = vadd.f32 %v1683_v33, %v662_v25 }
 0x131   : >> { %v673_v45 = vpop.permute.xlu1 %672 }
 0x132   : >> { %v671_v47 = vpop.permute.xlu0 %670  ;;  %v677_v29 = vadd.f32 %v673_v45, %v657_v32  ;;  %v861_v45 = vstv %s1716_s28 }
 0x133   : >> { %v1690_v50 = vpop.permute.xlu2 %756  ;;  %v676_v4 = vadd.f32 %v671_v47, %v656_v0  ;;  %v800_v0 = vmul.f32 %v1636_v3, %v799_v53 }
 0x134   : >> { %v705_v48 = vadd.f32 %v1685_v37, %v677_v29 }
 0x136   : >> { %v727_v57 = vadd.f32 %v725_v49, %v705_v48 }
 0x139   : >> { %v699_v44 = vpop.permute.xlu1 %698 }
 0x13a   : >> { %v687_v51 = vpop.permute.xlu0 %686  ;;  %v704_v9 = vadd.f32 %v699_v44, %v676_v4 }
 0x13b   : >> { %v1697_v63 = vpop.permute.xlu2 %782  ;;  %v691_v23 = vadd.f32 %v687_v51, %v663_v14 }
 0x13c   : >> { %v726_v19 = vadd.f32 %v724_v10, %v704_v9 }
 0x13e   : >> { %v746_v56 = vadd.f32 %v741_v41, %v726_v19  ;;  %v730_v41 = vmul.f32 %v1600_v26, %v729_v22  ;;  %v801_v26 = vmul.f32 %v1643_v16, %v799_v53 }
 0x141   : >> { %v715_v58 = vpop.permute.xlu1 %714 }
 0x142   : >> { %v713_v62 = vpop.permute.xlu0 %712  ;;  %v719_v28 = vadd.f32 %v715_v58, %v691_v23 }
 0x143   : >> { %v1707_v12 = vpop.permute.xlu2 %812  ;;  %v718_v39 = vadd.f32 %v713_v62, %v690_v34  ;;  %v795_v62 = vmul.f32 %v1643_v16, %v793_v24 }
 0x144   : >> { %v733_v36 = vadd.f32 %v731_v60, %v719_v28 }
 0x145   : >> { %v732_v33 = vadd.f32 %v730_v41, %v718_v39 }
 0x146   : >> { %v761_v51 = vadd.f32 %v1690_v50, %v733_v36 }
 0x149   : >> { %v755_v31 = vpop.permute.xlu1 %754 }
 0x14a   : >> { %v743_v11 = vpop.permute.xlu0 %742  ;;  %v760_v37 = vadd.f32 %v755_v31, %v732_v33 }
 0x14b   : >> { %v839_v38 = vpop.permute.xlu2 %838  ;;  %v747_v58 = vadd.f32 %v743_v11, %v727_v57 }
 0x14c   : >> { %v788_v1 = vadd.f32 %v1697_v63, %v760_v37 }
 0x14e   : >> { %v802_v27 = vadd.f32 %v800_v0, %v788_v1 }
 0x151   : >> { %v771_v21 = vpop.permute.xlu1 %770 }
 0x152   : >> { %v769_v30 = vpop.permute.xlu0 %768  ;;  %v775_v61 = vadd.f32 %v771_v21, %v747_v58 }
 0x153   : >> { %v774_v46 = vadd.f32 %v769_v30, %v746_v56  ;;  %v855_v42 = vpop.permute.xlu2 %854 }
 0x154   : >> { %v797_v31 = vadd.f32 %v795_v62, %v775_v61 }
 0x155   : >> { %v796_v47 = vadd.f32 %v794_v40, %v774_v46 }
 0x156   : >> { %v817_v10 = vadd.f32 %v1707_v12, %v797_v31 }
 0x159   : >> { %v811_v44 = vpop.permute.xlu1 %810 }
 0x15a   : >> { %v816_v43 = vadd.f32 %v811_v44, %v796_v47  ;;  %v785_v52 = vpop.permute.xlu0 %784 }
 0x15b   : >> { %v789_v54 = vadd.f32 %v785_v52, %v761_v51 }
 0x15c   : >> { %v844_v55 = vadd.f32 %v839_v38, %v816_v43 }
 0x15d   : >> { %v803_v59 = vadd.f32 %v801_v26, %v789_v54 }
 0x15e   : >> { %v862_v35 = vadd.f32 %v861_v45, %v844_v55 }
 0x160   : >> { %v864_v50 = vmax.f32 %v862_v35, 0.0 }
 0x161   : >> { %v827_v7 = vpop.permute.xlu1 %826 }
 0x162   : >> { %868 = vst.msk [vmem:[%s1732_s4] sm:$0xff] %vm867_vm0, %v864_v50  ;;  %v831_v2 = vadd.f32 %v827_v7, %v803_v59  ;;  %v825_v4 = vpop.permute.xlu0 %824 }
 0x163   : >> { %v830_v16 = vadd.f32 %v825_v4, %v802_v27 }
 0x164   : >> { %v859_v5 = vadd.f32 %v855_v42, %v831_v2 }
 0x166   : >> { %v874_v6 = vadd.f32 %v872_v13, %v859_v5 }
 0x168   : >> { %v876_v9 = vmax.f32 %v874_v6, 0.0 }
 0x169   : >> { %v853_v11 = vpop.permute.xlu1 %852 }
 0x16a   : >> { %1072 = vst.msk [vmem:[%s1732_s4 + $0xe8] sm:$0x3f] %vm869_vm1, %v876_v9  ;;  %v858_v63 = vadd.f32 %v853_v11, %v830_v16  ;;  %v841_v8 = vpop.permute.xlu0 %840 }
 0x16b   : >> { %v845_v15 = vadd.f32 %v841_v8, %v817_v10 }
 0x16c   : >> { %v873_v17 = vadd.f32 %v872_v13, %v858_v63 }
 0x16d   : >> { %v863_v3 = vadd.f32 %v861_v45, %v845_v15  ;;  %224 = sbr.rel (!%p222_p5) target bundleno = 54 (0x36), region = 93 }
 0x16e   : >> { %v875_v14 = vmax.f32 %v873_v17, 0.0 }
 0x16f   : >> { %v865_v19 = vmax.f32 %v863_v3, 0.0 }
 0x170   : >> { %1071 = vst.msk [vmem:[%s1732_s4 + $0xe0] sm:$0xff] %vm867_vm0, %v875_v14 }
 0x171   : >> { %870 = vst.msk [vmem:[%s1732_s4 + $0x8] sm:$0x3f] %vm869_vm1, %v865_v19 }
 0x172 PF: > { %p15_p8 = scmp.ge.s32.totalorder %s1309_s17, 4   ;;  %s1769_s12 = smov %s1247_s13 }
 0x173   : > { %s1770_s13 = smov %s1251_s14  ;;  %s1771_s14 = smov %s1319_s20 }
 0x174   : > { %s1772_s15 = smov %s1309_s17  ;;  %17 = sbr.rel (!%p15_p8) target bundleno = 5 (0x5), region = 104 }
 0x179   :  { %902 = vsyncpa [#allocation3], 1 }
 0x17a   :  { %904 = vsyncpa [#allocation3 + $0x1], 1 }
 0x17b   :  { %905 = vsyncpa [#allocation4], 1 }
 0x17c   :  { %907 = vsyncpa [#allocation4 + $0x1], 1 }
 0x17d   :  { %908 = vsyncpa [#allocation7], 1 }

</bundles_post_ra>
